<compile_context>
chip_gen: v6e
topology: v6e:2x2x1
jax: 0.10.0
libtpu: 0.0.40
codegen_flags: <defaults>
</compile_context>

<pallas_src>
import math
from functools import partial

import jax
import jax.numpy as jnp
from jax.experimental import pallas as pl
from jax.experimental.pallas import tpu as pltpu

CURVATURE = -1.0
EPS = 1e-15        # geoopt clamp_min on norms / denominators
EPS2 = 1e-30       # EPS**2: clamp on squared norms (sqrt(clamp) == EPS)
PROJ_EPS = 4e-3    # geoopt float32 ball-boundary eps
ATANH_EPS = 1e-7   # artanh input clamp


# ----------------------- in-kernel hyperbolic helpers (lane-dense scalar rows) ------------

def _tan_k(t, sk, inv_sk):
    return jnp.tanh(sk * t) * inv_sk


def _artan_k(xn, sk, inv_sk):
    z = jnp.clip(sk * xn, -1.0 + ATANH_EPS, 1.0 - ATANH_EPS)
    return (0.5 * inv_sk) * jnp.log((1.0 + z) / (1.0 - z))


def _artk_over_norm(x2, sk, inv_sk):
    """artan_k(||x||) / ||x|| from the squared norm x2 (any (S, B) row layout)."""
    inv_n = jax.lax.rsqrt(jnp.maximum(x2, EPS2))
    n = jnp.maximum(x2, EPS2) * inv_n                        # = max(||x||, EPS)
    return _artan_k(n, sk, inv_sk) * inv_n


def _mobius_scalars(mx2, xy_raw, artk_over_xn, bq, k, sk, inv_sk):
    """Per-column scalars of HLinear = project(mobius_add(mobius_matvec(W,x), expmap0(b))).

    mx2, xy_raw, artk_over_xn : (S, B) lane-dense rows (S = #streams packed on sublanes)
    bq                        : (S, 1) = ||expmap0(b)||^2 per stream
    Returns coefA, coefB, proj_scale, y2 with
        y = (coefA * Mx + coefB * expmap0(b)) * proj_scale,   y2 = ||y||^2 (analytic).
    """
    inv_mxn = jax.lax.rsqrt(jnp.maximum(mx2, EPS2))
    mxn = jnp.maximum(mx2, EPS2) * inv_mxn                   # = max(||Mx||, EPS)
    tk = _tan_k(mxn * artk_over_xn, sk, inv_sk)
    mv_scale = tk * inv_mxn                                  # mobius-matvec scale applied to Mx
    x2 = tk * tk                                             # analytic ||matvec result||^2
    xy = mv_scale * xy_raw                                   # <matvec result, expmap0(b)>
    alpha = 1.0 - 2.0 * k * xy - k * bq
    beta = 1.0 + k * x2
    denom = jnp.maximum(1.0 - 2.0 * k * xy + (k * k) * x2 * bq, EPS)
    inv_d = 1.0 / denom
    coefA = alpha * mv_scale * inv_d
    coefB = beta * inv_d
    m2 = (alpha * alpha * x2 + 2.0 * alpha * beta * xy + beta * beta * bq) * (inv_d * inv_d)
    maxnorm = (1.0 - PROJ_EPS) * inv_sk
    p_scale = jnp.minimum(1.0, maxnorm * jax.lax.rsqrt(jnp.maximum(m2, EPS2)))
    y2 = m2 * p_scale * p_scale
    return coefA, coefB, p_scale, y2


# ----------------------------- Pallas kernel ---------------------------------------------

def _hyper_dueling_kernel(x_ref, w1a_ref, b1e_ref, w2a_ref, b2e_ref,
                          wh1a_ref, bh1e_ref, wfa_ref, bfe_ref, bq_ref,
                          out_ref, *, k, out_dim):
    sk = math.sqrt(-k)
    inv_sk = 1.0 / sk
    bt = x_ref.shape[1]                    # batch tile (lanes)
    hid1 = w1a_ref.shape[0] - 1            # 32
    emb = w2a_ref.shape[0] - 1             # embedding dim
    hid = (wh1a_ref.shape[0] - 2) // 2     # 32
    nout = 1 + out_dim

    # ---- state -> project(expmap0(state))  (features on sublanes, batch on lanes) --------
    u = x_ref[...]
    s2 = jnp.sum(u * u, axis=0, keepdims=True)               # (1, bt)
    inv_sn = jax.lax.rsqrt(jnp.maximum(s2, EPS2))
    sn = jnp.maximum(s2, EPS2) * inv_sn
    tk0 = _tan_k(sn, sk, inv_sk)
    x2 = tk0 * tk0
    maxnorm = (1.0 - PROJ_EPS) * inv_sk
    p0 = jnp.minimum(1.0, maxnorm * jax.lax.rsqrt(jnp.maximum(x2, EPS2)))
    x = u * (tk0 * inv_sn * p0)
    x2 = x2 * p0 * p0

    # ---- feature layer 1: HLinear(input_dim, 32) ------------------------------------------
    art = _artk_over_norm(x2, sk, inv_sk)                     # (1, bt)
    m = jnp.dot(w1a_ref[...], x, preferred_element_type=jnp.float32)    # (33, bt)
    mx = m[0:hid1, :]
    xy = m[hid1:hid1 + 1, :]                                  # <Mx, expmap0(b)> from the matmul
    mx2 = jnp.sum(mx * mx, axis=0, keepdims=True)
    cA, cB, ps, h2 = _mobius_scalars(mx2, xy, art, bq_ref[0:1, :], k, sk, inv_sk)
    h = (cA * mx + cB * b1e_ref[...]) * ps                    # (32, bt)

    # ---- feature layer 2: HLinear(32, emb) -------------------------------------------------
    art = _artk_over_norm(h2, sk, inv_sk)
    m = jnp.dot(w2a_ref[...], h, preferred_element_type=jnp.float32)    # (emb+1, bt)
    mx = m[0:emb, :]
    xy = m[emb:emb + 1, :]
    mx2 = jnp.sum(mx * mx, axis=0, keepdims=True)
    cA, cB, ps, f2 = _mobius_scalars(mx2, xy, art, bq_ref[1:2, :], k, sk, inv_sk)
    feat = (cA * mx + cB * b2e_ref[...]) * ps                 # (emb, bt)

    # ---- fused value/advantage first layers: 2x HLinear(emb, 32) + ReLU --------------------
    art = _artk_over_norm(f2, sk, inv_sk)                     # shared input norm, (1, bt)
    m = jnp.dot(wh1a_ref[...], feat, preferred_element_type=jnp.float32)  # (2*hid+2, bt)
    mx = m[0:2 * hid, :]                                      # [value rows | advantage rows]
    xy = m[2 * hid:2 * hid + 2, :]                            # (2, bt) packed bias dots
    mx2_v = jnp.sum(m[0:hid, :] * m[0:hid, :], axis=0, keepdims=True)
    mx2_a = jnp.sum(m[hid:2 * hid, :] * m[hid:2 * hid, :], axis=0, keepdims=True)
    mx2 = jnp.concatenate([mx2_v, mx2_a], axis=0)             # (2, bt) packed scalar chain
    cA, cB, ps, _ = _mobius_scalars(mx2, xy, art, bq_ref[2:4, :], k, sk, inv_sk)
    is_v = jax.lax.broadcasted_iota(jnp.int32, (2 * hid, bt), 0) < hid
    cA_m = jnp.where(is_v, cA[0:1, :], cA[1:2, :])
    cB_m = jnp.where(is_v, cB[0:1, :], cB[1:2, :])
    ps_m = jnp.where(is_v, ps[0:1, :], ps[1:2, :])
    va1 = jnp.maximum((cA_m * mx + cB_m * bh1e_ref[...]) * ps_m, 0.0)    # (2*hid, bt), ReLU'd

    # ---- final block-diagonal head: HLinear(32,1) | HLinear(32,out_dim) --------------------
    v1q = jnp.sum(va1[0:hid, :] * va1[0:hid, :], axis=0, keepdims=True)
    a1q = jnp.sum(va1[hid:2 * hid, :] * va1[hid:2 * hid, :], axis=0, keepdims=True)
    art = _artk_over_norm(jnp.concatenate([v1q, a1q], axis=0), sk, inv_sk)   # (2, bt)
    m = jnp.dot(wfa_ref[...], va1, preferred_element_type=jnp.float32)   # (nout+2, bt)
    mx = m[0:nout, :]                                         # row 0 = value, rows 1.. = adv
    xy = m[nout:nout + 2, :]                                  # (2, bt)
    mx2_all = jnp.sum(mx * mx, axis=0, keepdims=True)
    mx2_v = m[0:1, :] * m[0:1, :]                             # value head has out=1 (no reduce)
    mx2 = jnp.concatenate([mx2_v, mx2_all - mx2_v], axis=0)   # (2, bt)
    cA, cB, ps, _ = _mobius_scalars(mx2, xy, art, bq_ref[4:6, :], k, sk, inv_sk)
    is_v = jax.lax.broadcasted_iota(jnp.int32, (nout, bt), 0) < 1
    cA_m = jnp.where(is_v, cA[0:1, :], cA[1:2, :])
    cB_m = jnp.where(is_v, cB[0:1, :], cB[1:2, :])
    ps_m = jnp.where(is_v, ps[0:1, :], ps[1:2, :])
    out_ref[...] = (cA_m * mx + cB_m * bfe_ref[...]) * ps_m   # packed (nout, bt) block


# ----------------------------- wrapper ----------------------------------------------------

def _expmap0_host(b, k):
    sk = math.sqrt(-k)
    bn = jnp.maximum(jnp.sqrt(jnp.sum(b * b, axis=-1, keepdims=True)), EPS)
    return jnp.tanh(sk * bn) / sk * b / bn


def hyper_dueling_dqn(state, params, output_dim, curvature=CURVATURE, tile_b=512):
    """state: (B, input_dim) float32. params: flat list of 12 arrays (see init_params)."""
    w1, b1, w2, b2, wv1, bv1, wv2, bv2, wa1, ba1, wa2, ba2 = params
    B, input_dim = state.shape
    k = float(curvature)
    f32 = jnp.float32
    nout = 1 + output_dim

    # ---- host-side, input-independent preprocessing (tiny XLA ops) ------------------------
    def prep(b):
        be = _expmap0_host(b.astype(f32), k)                  # (1, out)
        return be, jnp.sum(be * be)                           # expmap0(bias), ||expmap0(bias)||^2

    b1e, b1q = prep(b1)
    b2e, b2q = prep(b2)
    bv1e, bv1q = prep(bv1)
    ba1e, ba1q = prep(ba1)
    bv2e, bv2q = prep(bv2)
    ba2e, ba2q = prep(ba2)

    # weights in torch (out, in) row layout so the kernel's matmuls are W @ x^T
    w1r, w2r = w1.T.astype(f32), w2.T.astype(f32)
    wv1r, wa1r = wv1.T.astype(f32), wa1.T.astype(f32)
    wv2r, wa2r = wv2.T.astype(f32), wa2.T.astype(f32)
    hid = wv1r.shape[0]                                       # 32

    # augment every weight with a precomputed expmap0(b)^T @ W row so <Mx, expmap0(b)> comes
    # straight out of the MXU instead of an extra cross-sublane reduce
    w1a = jnp.concatenate([w1r, b1e @ w1r], axis=0)                          # (33, in)
    w2a = jnp.concatenate([w2r, b2e @ w2r], axis=0)                          # (emb+1, 32)
    wh1a = jnp.concatenate([wv1r, wa1r, bv1e @ wv1r, ba1e @ wa1r], axis=0)   # (2*hid+2, emb)
    zv = jnp.zeros((1, hid), f32)
    za = jnp.zeros((output_dim, hid), f32)
    wfa = jnp.concatenate([                                                  # block-diag final
        jnp.concatenate([wv2r, zv], axis=1),
        jnp.concatenate([za, wa2r], axis=1),
        jnp.concatenate([bv2e @ wv2r, zv], axis=1),
        jnp.concatenate([zv, ba2e @ wa2r], axis=1),
    ], axis=0)                                                               # (nout+2, 2*hid)

    b1e_col = b1e.reshape(-1, 1)                                             # (32, 1)
    b2e_col = b2e.reshape(-1, 1)                                             # (emb, 1)
    bh1e_col = jnp.concatenate([bv1e, ba1e], axis=1).reshape(-1, 1)          # (2*hid, 1)
    bfe_col = jnp.concatenate([bv2e, ba2e], axis=1).reshape(-1, 1)           # (nout, 1)
    bq_pack = jnp.concatenate(
        [jnp.stack([b1q, b2q, bv1q, ba1q, bv2q, ba2q]), jnp.zeros((2,), f32)]
    ).reshape(8, 1)

    # ---- batch tiling along the lane axis --------------------------------------------------
    Bp = ((max(B, 1) + 127) // 128) * 128
    tile_b = max(128, (int(tile_b) // 128) * 128)
    tile_b = min(tile_b, Bp)
    if Bp // tile_b < 2 and Bp >= 256:
        # make sure the "parallel" grid has >= 2 steps so v7x's two TensorCores both work
        tile_b = ((Bp // 2 + 127) // 128) * 128
    Bp = ((Bp + tile_b - 1) // tile_b) * tile_b
    grid = (Bp // tile_b,)

    state_t = jnp.pad(state.T.astype(f32), ((0, 0), (0, Bp - B)))            # (in, Bp)

    weight_args = (w1a, b1e_col, w2a, b2e_col, wh1a, bh1e_col, wfa, bfe_col, bq_pack)
    out = pl.pallas_call(
        partial(_hyper_dueling_kernel, k=k, out_dim=output_dim),
        out_shape=jax.ShapeDtypeStruct((nout, Bp), f32),
        grid=grid,
        in_specs=[pl.BlockSpec((input_dim, tile_b), lambda i: (0, i))]
                 + [pl.BlockSpec(w.shape, lambda i: (0, 0)) for w in weight_args],
        out_specs=pl.BlockSpec((nout, tile_b), lambda i: (0, i)),
        compiler_params=pltpu.CompilerParams(dimension_semantics=("parallel",)),
    )(state_t, *weight_args)

    # unpack + dueling combine.  torch's advantages.mean() is one scalar over ALL batch rows
    # and actions, so it must be taken here over the full un-padded batch (not per tile).
    v = out[0:1, :B].T                                        # (B, 1)
    a = out[1:nout, :B].T                                     # (B, output_dim)
    return v + (a - jnp.mean(a))


# ----------------------------- pure-JAX reference (validation only) -----------------------

def _reference_forward(state, params, output_dim, k=CURVATURE):
    w1, b1, w2, b2, wv1, bv1, wv2, bv2, wa1, ba1, wa2, ba2 = params
    sk = math.sqrt(-k)

    def norm(x):
        return jnp.maximum(jnp.sqrt(jnp.sum(x * x, axis=-1, keepdims=True)), EPS)

    def tan_k(x):
        return jnp.tanh(sk * x) / sk

    def artan_k(x):
        z = jnp.clip(sk * x, -1.0 + ATANH_EPS, 1.0 - ATANH_EPS)
        return jnp.arctanh(z) / sk

    def expmap0(u):
        un = norm(u)
        return tan_k(un) * u / un

    def project(x):
        maxn = (1.0 - PROJ_EPS) / sk
        xn = norm(x)
        return jnp.where(xn > maxn, x / xn * maxn, x)

    def mobius_add(x, y):
        x2 = jnp.sum(x * x, -1, keepdims=True)
        y2 = jnp.sum(y * y, -1, keepdims=True)
        xy = jnp.sum(x * y, -1, keepdims=True)
        num = (1.0 - 2.0 * k * xy - k * y2) * x + (1.0 + k * x2) * y
        den = 1.0 - 2.0 * k * xy + k * k * x2 * y2
        return num / jnp.maximum(den, EPS)

    def mobius_matvec(x, wt):
        xn = norm(x)
        mx = x @ wt
        mxn = norm(mx)
        res = tan_k(mxn / xn * artan_k(xn)) * mx / mxn
        cond = jnp.all(mx == 0.0, -1, keepdims=True)
        return jnp.where(cond, 0.0, res)

    def hlinear(x, wt, b):
        return project(mobius_add(mobius_matvec(x, wt), expmap0(b)))

    x = project(expmap0(state))
    h = hlinear(x, w1, b1)
    feat = hlinear(h, w2, b2)
    v = hlinear(feat, wv1, bv1)
    v = jnp.maximum(v, 0.0)
    v = hlinear(v, wv2, bv2)
    a = hlinear(feat, wa1, ba1)
    a = jnp.maximum(a, 0.0)
    a = hlinear(a, wa2, ba2)
    return v + (a - jnp.mean(a))


def init_params(key, input_dim, output_dim, emb):
    """Deterministic synthetic init (uniform +-1/sqrt(fan_in)), nn.Linear-style.
    Weights returned pre-transposed as (in, out); biases as (1, out)."""
    def lin(k, fan_in, fan_out):
        kw, kb = jax.random.split(k)
        bound = 1.0 / jnp.sqrt(fan_in)
        w_t = jax.random.uniform(kw, (fan_in, fan_out), jnp.float32, -bound, bound)
        b = jax.random.uniform(kb, (1, fan_out), jnp.float32, -bound, bound)
        return w_t, b

    keys = jax.random.split(key, 6)
    w1, b1 = lin(keys[0], input_dim, 32)
    w2, b2 = lin(keys[1], 32, emb)
    wv1, bv1 = lin(keys[2], emb, 32)
    wv2, bv2 = lin(keys[3], 32, 1)
    wa1, ba1 = lin(keys[4], emb, 32)
    wa2, ba2 = lin(keys[5], 32, output_dim)
    return [w1, b1, w2, b2, wv1, bv1, wv2, bv2, wa1, ba1, wa2, ba2]


if __name__ == "__main__":
    INPUT_DIM = 16
    OUTPUT_DIM = 5
    EMB = 128

    key = jax.random.PRNGKey(0)
    k_params, k_s1, k_s2 = jax.random.split(key, 3)
    params = init_params(k_params, INPUT_DIM, OUTPUT_DIM, EMB)

    # Case 1: small batch -> single 128-lane tile (padded), grid=(1,).
    state = jax.random.normal(k_s1, (8, INPUT_DIM), jnp.float32)
    q = hyper_dueling_dqn(state, params, OUTPUT_DIM)
    jax.block_until_ready(q)
    q_ref = _reference_forward(state, params, OUTPUT_DIM)
    assert q.shape == (8, OUTPUT_DIM)
    assert bool(jnp.all(jnp.isfinite(q)))
    assert bool(jnp.allclose(q, q_ref, rtol=2e-2, atol=2e-2))

    # Case 2: batch large enough for a 2-step parallel grid (exercises tiling, padding,
    # global-mean semantics across tiles).
    state2 = jax.random.normal(k_s2, (200, INPUT_DIM), jnp.float32)
    q2 = hyper_dueling_dqn(state2, params, OUTPUT_DIM, tile_b=512)
    jax.block_until_ready(q2)
    q2_ref = _reference_forward(state2, params, OUTPUT_DIM)
    assert q2.shape == (200, OUTPUT_DIM)
    assert bool(jnp.all(jnp.isfinite(q2)))
    assert bool(jnp.allclose(q2, q2_ref, rtol=2e-2, atol=2e-2))

    print("KERNEL_OK")
</pallas_src>

<mosaic_0001>
module attributes {stable_mosaic.version = 11 : i64} {
  func.func @_hyper_dueling_kernel(%arg0: i32, %arg1: memref<16x128xf32, #tpu.memory_space<vmem>>, %arg2: memref<33x16xf32, #tpu.memory_space<vmem>>, %arg3: memref<32x1xf32, #tpu.memory_space<vmem>>, %arg4: memref<129x32xf32, #tpu.memory_space<vmem>>, %arg5: memref<128x1xf32, #tpu.memory_space<vmem>>, %arg6: memref<66x128xf32, #tpu.memory_space<vmem>>, %arg7: memref<64x1xf32, #tpu.memory_space<vmem>>, %arg8: memref<8x64xf32, #tpu.memory_space<vmem>>, %arg9: memref<6x1xf32, #tpu.memory_space<vmem>>, %arg10: memref<8x1xf32, #tpu.memory_space<vmem>>, %arg11: memref<6x128xf32, #tpu.memory_space<vmem>>) attributes {dimension_semantics = [#tpu.dimension_semantics<parallel>], iteration_bounds = array<i64: 1>, scalar_prefetch = 0 : i64, scratch_operands = 0 : i64, tpu.core_type = #tpu.core_type<tc>, window_params = [{transform_indices = @transform_0, window_bounds = array<i64: 16, 128>}, {pipeline_mode = #tpu.pipeline_mode<synchronous>, transform_indices = @transform_1, window_bounds = array<i64: 33, 16>}, {pipeline_mode = #tpu.pipeline_mode<synchronous>, transform_indices = @transform_2, window_bounds = array<i64: 32, 1>}, {pipeline_mode = #tpu.pipeline_mode<synchronous>, transform_indices = @transform_3, window_bounds = array<i64: 129, 32>}, {pipeline_mode = #tpu.pipeline_mode<synchronous>, transform_indices = @transform_4, window_bounds = array<i64: 128, 1>}, {pipeline_mode = #tpu.pipeline_mode<synchronous>, transform_indices = @transform_5, window_bounds = array<i64: 66, 128>}, {pipeline_mode = #tpu.pipeline_mode<synchronous>, transform_indices = @transform_6, window_bounds = array<i64: 64, 1>}, {pipeline_mode = #tpu.pipeline_mode<synchronous>, transform_indices = @transform_7, window_bounds = array<i64: 8, 64>}, {pipeline_mode = #tpu.pipeline_mode<synchronous>, transform_indices = @transform_8, window_bounds = array<i64: 6, 1>}, {pipeline_mode = #tpu.pipeline_mode<synchronous>, transform_indices = @transform_9, window_bounds = array<i64: 8, 1>}, {transform_indices = @transform_10, window_bounds = array<i64: 6, 128>}]} {
    %c0 = arith.constant 0 : index
    %c0_0 = arith.constant 0 : index
    %0 = vector.load %arg1[%c0, %c0_0] : memref<16x128xf32, #tpu.memory_space<vmem>>, vector<16x128xf32>
    %1 = arith.mulf %0, %0 : vector<16x128xf32>
    %cst = arith.constant dense<0.000000e+00> : vector<128xf32>
    %2 = vector.multi_reduction <add>, %1, %cst [0] : vector<16x128xf32> to vector<128xf32>
    %3 = vector.shape_cast %2 : vector<128xf32> to vector<1x128xf32>
    %cst_1 = arith.constant 1.000000e-30 : f32
    %4 = vector.broadcast %cst_1 : f32 to vector<1x128xf32>
    %5 = arith.maximumf %3, %4 : vector<1x128xf32>
    %6 = math.rsqrt %5 : vector<1x128xf32>
    %cst_2 = arith.constant 1.000000e-30 : f32
    %7 = vector.broadcast %cst_2 : f32 to vector<1x128xf32>
    %8 = arith.maximumf %3, %7 : vector<1x128xf32>
    %9 = arith.mulf %8, %6 : vector<1x128xf32>
    %cst_3 = arith.constant 1.000000e+00 : f32
    %10 = vector.broadcast %cst_3 : f32 to vector<1x128xf32>
    %11 = arith.mulf %10, %9 : vector<1x128xf32>
    %12 = math.tanh %11 : vector<1x128xf32>
    %cst_4 = arith.constant 1.000000e+00 : f32
    %13 = vector.broadcast %cst_4 : f32 to vector<1x128xf32>
    %14 = arith.mulf %12, %13 : vector<1x128xf32>
    %15 = arith.mulf %14, %14 : vector<1x128xf32>
    %cst_5 = arith.constant 1.000000e-30 : f32
    %16 = vector.broadcast %cst_5 : f32 to vector<1x128xf32>
    %17 = arith.maximumf %15, %16 : vector<1x128xf32>
    %18 = math.rsqrt %17 : vector<1x128xf32>
    %cst_6 = arith.constant 0.995999991 : f32
    %19 = vector.broadcast %cst_6 : f32 to vector<1x128xf32>
    %20 = arith.mulf %19, %18 : vector<1x128xf32>
    %cst_7 = arith.constant 1.000000e+00 : f32
    %21 = vector.broadcast %cst_7 : f32 to vector<1x128xf32>
    %22 = arith.minimumf %21, %20 : vector<1x128xf32>
    %23 = arith.mulf %14, %6 : vector<1x128xf32>
    %24 = arith.mulf %23, %22 : vector<1x128xf32>
    %25 = vector.broadcast %24 : vector<1x128xf32> to vector<16x128xf32>
    %26 = arith.mulf %0, %25 : vector<16x128xf32>
    %27 = arith.mulf %15, %22 : vector<1x128xf32>
    %28 = arith.mulf %27, %22 : vector<1x128xf32>
    %cst_8 = arith.constant 1.000000e-30 : f32
    %29 = vector.broadcast %cst_8 : f32 to vector<1x128xf32>
    %30 = arith.maximumf %28, %29 : vector<1x128xf32>
    %31 = math.rsqrt %30 : vector<1x128xf32>
    %cst_9 = arith.constant 1.000000e-30 : f32
    %32 = vector.broadcast %cst_9 : f32 to vector<1x128xf32>
    %33 = arith.maximumf %28, %32 : vector<1x128xf32>
    %34 = arith.mulf %33, %31 : vector<1x128xf32>
    %cst_10 = arith.constant 1.000000e+00 : f32
    %35 = vector.broadcast %cst_10 : f32 to vector<1x128xf32>
    %36 = arith.mulf %35, %34 : vector<1x128xf32>
    %cst_11 = arith.constant -0.99999988 : f32
    %cst_12 = arith.constant 0.99999988 : f32
    %37 = vector.broadcast %cst_11 : f32 to vector<1x128xf32>
    %38 = arith.maximumf %37, %36 : vector<1x128xf32>
    %39 = vector.broadcast %cst_12 : f32 to vector<1x128xf32>
    %40 = arith.minimumf %39, %38 : vector<1x128xf32>
    %cst_13 = arith.constant 1.000000e+00 : f32
    %41 = vector.broadcast %cst_13 : f32 to vector<1x128xf32>
    %42 = arith.addf %41, %40 : vector<1x128xf32>
    %cst_14 = arith.constant 1.000000e+00 : f32
    %43 = vector.broadcast %cst_14 : f32 to vector<1x128xf32>
    %44 = arith.subf %43, %40 : vector<1x128xf32>
    %45 = arith.divf %42, %44 : vector<1x128xf32>
    %46 = math.log %45 : vector<1x128xf32>
    %cst_15 = arith.constant 5.000000e-01 : f32
    %47 = vector.broadcast %cst_15 : f32 to vector<1x128xf32>
    %48 = arith.mulf %47, %46 : vector<1x128xf32>
    %49 = arith.mulf %48, %31 : vector<1x128xf32>
    %c0_16 = arith.constant 0 : index
    %c0_17 = arith.constant 0 : index
    %50 = vector.load %arg2[%c0_16, %c0_17] : memref<33x16xf32, #tpu.memory_space<vmem>>, vector<33x16xf32>
    %cst_18 = arith.constant dense<0.000000e+00> : vector<33x128xf32>
    %51 = tpu.matmul %50, %26, %cst_18 {dimension_numbers = #tpu.dot_dimension_numbers<[1], [0], [0], [1], [0, 0, 1, 1], [], []>} : vector<33x16xf32>, vector<16x128xf32>, vector<33x128xf32> -> vector<33x128xf32>
    %52 = vector.extract_strided_slice %51 {offsets = [0, 0], sizes = [32, 128], strides = [1, 1]} : vector<33x128xf32> to vector<32x128xf32>
    %53 = vector.extract_strided_slice %51 {offsets = [32, 0], sizes = [1, 128], strides = [1, 1]} : vector<33x128xf32> to vector<1x128xf32>
    %54 = arith.mulf %52, %52 : vector<32x128xf32>
    %cst_19 = arith.constant dense<0.000000e+00> : vector<128xf32>
    %55 = vector.multi_reduction <add>, %54, %cst_19 [0] : vector<32x128xf32> to vector<128xf32>
    %56 = vector.shape_cast %55 : vector<128xf32> to vector<1x128xf32>
    %c0_20 = arith.constant 0 : index
    %c0_21 = arith.constant 0 : index
    %57 = vector.load %arg10[%c0_20, %c0_21] : memref<8x1xf32, #tpu.memory_space<vmem>>, vector<1x1xf32>
    %cst_22 = arith.constant 1.000000e-30 : f32
    %58 = vector.broadcast %cst_22 : f32 to vector<1x128xf32>
    %59 = arith.maximumf %56, %58 : vector<1x128xf32>
    %60 = math.rsqrt %59 : vector<1x128xf32>
    %cst_23 = arith.constant 1.000000e-30 : f32
    %61 = vector.broadcast %cst_23 : f32 to vector<1x128xf32>
    %62 = arith.maximumf %56, %61 : vector<1x128xf32>
    %63 = arith.mulf %62, %60 : vector<1x128xf32>
    %64 = arith.mulf %63, %49 : vector<1x128xf32>
    %cst_24 = arith.constant 1.000000e+00 : f32
    %65 = vector.broadcast %cst_24 : f32 to vector<1x128xf32>
    %66 = arith.mulf %65, %64 : vector<1x128xf32>
    %67 = math.tanh %66 : vector<1x128xf32>
    %cst_25 = arith.constant 1.000000e+00 : f32
    %68 = vector.broadcast %cst_25 : f32 to vector<1x128xf32>
    %69 = arith.mulf %67, %68 : vector<1x128xf32>
    %70 = arith.mulf %69, %60 : vector<1x128xf32>
    %71 = arith.mulf %69, %69 : vector<1x128xf32>
    %72 = arith.mulf %70, %53 : vector<1x128xf32>
    %cst_26 = arith.constant -2.000000e+00 : f32
    %73 = vector.broadcast %cst_26 : f32 to vector<1x128xf32>
    %74 = arith.mulf %73, %72 : vector<1x128xf32>
    %cst_27 = arith.constant 1.000000e+00 : f32
    %75 = vector.broadcast %cst_27 : f32 to vector<1x128xf32>
    %76 = arith.subf %75, %74 : vector<1x128xf32>
    %cst_28 = arith.constant -1.000000e+00 : f32
    %77 = vector.broadcast %cst_28 : f32 to vector<1x1xf32>
    %78 = arith.mulf %77, %57 : vector<1x1xf32>
    %79 = vector.broadcast %78 : vector<1x1xf32> to vector<1x128xf32>
    %80 = arith.subf %76, %79 : vector<1x128xf32>
    %cst_29 = arith.constant -1.000000e+00 : f32
    %81 = vector.broadcast %cst_29 : f32 to vector<1x128xf32>
    %82 = arith.mulf %81, %71 : vector<1x128xf32>
    %cst_30 = arith.constant 1.000000e+00 : f32
    %83 = vector.broadcast %cst_30 : f32 to vector<1x128xf32>
    %84 = arith.addf %83, %82 : vector<1x128xf32>
    %cst_31 = arith.constant -2.000000e+00 : f32
    %85 = vector.broadcast %cst_31 : f32 to vector<1x128xf32>
    %86 = arith.mulf %85, %72 : vector<1x128xf32>
    %cst_32 = arith.constant 1.000000e+00 : f32
    %87 = vector.broadcast %cst_32 : f32 to vector<1x128xf32>
    %88 = arith.subf %87, %86 : vector<1x128xf32>
    %cst_33 = arith.constant 1.000000e+00 : f32
    %89 = vector.broadcast %cst_33 : f32 to vector<1x128xf32>
    %90 = arith.mulf %89, %71 : vector<1x128xf32>
    %91 = vector.broadcast %57 : vector<1x1xf32> to vector<1x128xf32>
    %92 = arith.mulf %90, %91 : vector<1x128xf32>
    %93 = arith.addf %88, %92 : vector<1x128xf32>
    %cst_34 = arith.constant 1.000000e-15 : f32
    %94 = vector.broadcast %cst_34 : f32 to vector<1x128xf32>
    %95 = arith.maximumf %93, %94 : vector<1x128xf32>
    %cst_35 = arith.constant 1.000000e+00 : f32
    %96 = vector.broadcast %cst_35 : f32 to vector<1x128xf32>
    %97 = arith.divf %96, %95 : vector<1x128xf32>
    %98 = arith.mulf %80, %70 : vector<1x128xf32>
    %99 = arith.mulf %98, %97 : vector<1x128xf32>
    %100 = arith.mulf %84, %97 : vector<1x128xf32>
    %101 = arith.mulf %80, %80 : vector<1x128xf32>
    %102 = arith.mulf %101, %71 : vector<1x128xf32>
    %cst_36 = arith.constant 2.000000e+00 : f32
    %103 = vector.broadcast %cst_36 : f32 to vector<1x128xf32>
    %104 = arith.mulf %103, %80 : vector<1x128xf32>
    %105 = arith.mulf %104, %84 : vector<1x128xf32>
    %106 = arith.mulf %105, %72 : vector<1x128xf32>
    %107 = arith.addf %102, %106 : vector<1x128xf32>
    %108 = arith.mulf %84, %84 : vector<1x128xf32>
    %109 = vector.broadcast %57 : vector<1x1xf32> to vector<1x128xf32>
    %110 = arith.mulf %108, %109 : vector<1x128xf32>
    %111 = arith.addf %107, %110 : vector<1x128xf32>
    %112 = arith.mulf %97, %97 : vector<1x128xf32>
    %113 = arith.mulf %111, %112 : vector<1x128xf32>
    %cst_37 = arith.constant 1.000000e-30 : f32
    %114 = vector.broadcast %cst_37 : f32 to vector<1x128xf32>
    %115 = arith.maximumf %113, %114 : vector<1x128xf32>
    %116 = math.rsqrt %115 : vector<1x128xf32>
    %cst_38 = arith.constant 0.995999991 : f32
    %117 = vector.broadcast %cst_38 : f32 to vector<1x128xf32>
    %118 = arith.mulf %117, %116 : vector<1x128xf32>
    %cst_39 = arith.constant 1.000000e+00 : f32
    %119 = vector.broadcast %cst_39 : f32 to vector<1x128xf32>
    %120 = arith.minimumf %119, %118 : vector<1x128xf32>
    %121 = arith.mulf %113, %120 : vector<1x128xf32>
    %122 = arith.mulf %121, %120 : vector<1x128xf32>
    %123 = vector.broadcast %99 : vector<1x128xf32> to vector<32x128xf32>
    %124 = arith.mulf %123, %52 : vector<32x128xf32>
    %c0_40 = arith.constant 0 : index
    %c0_41 = arith.constant 0 : index
    %125 = vector.load %arg3[%c0_40, %c0_41] : memref<32x1xf32, #tpu.memory_space<vmem>>, vector<32x1xf32>
    %126 = vector.broadcast %100 : vector<1x128xf32> to vector<32x128xf32>
    %127 = vector.broadcast %125 : vector<32x1xf32> to vector<32x128xf32>
    %128 = arith.mulf %126, %127 : vector<32x128xf32>
    %129 = arith.addf %124, %128 : vector<32x128xf32>
    %130 = vector.broadcast %120 : vector<1x128xf32> to vector<32x128xf32>
    %131 = arith.mulf %129, %130 : vector<32x128xf32>
    %cst_42 = arith.constant 1.000000e-30 : f32
    %132 = vector.broadcast %cst_42 : f32 to vector<1x128xf32>
    %133 = arith.maximumf %122, %132 : vector<1x128xf32>
    %134 = math.rsqrt %133 : vector<1x128xf32>
    %cst_43 = arith.constant 1.000000e-30 : f32
    %135 = vector.broadcast %cst_43 : f32 to vector<1x128xf32>
    %136 = arith.maximumf %122, %135 : vector<1x128xf32>
    %137 = arith.mulf %136, %134 : vector<1x128xf32>
    %cst_44 = arith.constant 1.000000e+00 : f32
    %138 = vector.broadcast %cst_44 : f32 to vector<1x128xf32>
    %139 = arith.mulf %138, %137 : vector<1x128xf32>
    %cst_45 = arith.constant -0.99999988 : f32
    %cst_46 = arith.constant 0.99999988 : f32
    %140 = vector.broadcast %cst_45 : f32 to vector<1x128xf32>
    %141 = arith.maximumf %140, %139 : vector<1x128xf32>
    %142 = vector.broadcast %cst_46 : f32 to vector<1x128xf32>
    %143 = arith.minimumf %142, %141 : vector<1x128xf32>
    %cst_47 = arith.constant 1.000000e+00 : f32
    %144 = vector.broadcast %cst_47 : f32 to vector<1x128xf32>
    %145 = arith.addf %144, %143 : vector<1x128xf32>
    %cst_48 = arith.constant 1.000000e+00 : f32
    %146 = vector.broadcast %cst_48 : f32 to vector<1x128xf32>
    %147 = arith.subf %146, %143 : vector<1x128xf32>
    %148 = arith.divf %145, %147 : vector<1x128xf32>
    %149 = math.log %148 : vector<1x128xf32>
    %cst_49 = arith.constant 5.000000e-01 : f32
    %150 = vector.broadcast %cst_49 : f32 to vector<1x128xf32>
    %151 = arith.mulf %150, %149 : vector<1x128xf32>
    %152 = arith.mulf %151, %134 : vector<1x128xf32>
    %c0_50 = arith.constant 0 : index
    %c0_51 = arith.constant 0 : index
    %153 = vector.load %arg4[%c0_50, %c0_51] : memref<129x32xf32, #tpu.memory_space<vmem>>, vector<129x32xf32>
    %cst_52 = arith.constant dense<0.000000e+00> : vector<129x128xf32>
    %154 = tpu.matmul %153, %131, %cst_52 {dimension_numbers = #tpu.dot_dimension_numbers<[1], [0], [0], [1], [0, 0, 1, 1], [], []>} : vector<129x32xf32>, vector<32x128xf32>, vector<129x128xf32> -> vector<129x128xf32>
    %155 = vector.extract_strided_slice %154 {offsets = [0, 0], sizes = [128, 128], strides = [1, 1]} : vector<129x128xf32> to vector<128x128xf32>
    %156 = vector.extract_strided_slice %154 {offsets = [128, 0], sizes = [1, 128], strides = [1, 1]} : vector<129x128xf32> to vector<1x128xf32>
    %157 = arith.mulf %155, %155 : vector<128x128xf32>
    %cst_53 = arith.constant dense<0.000000e+00> : vector<128xf32>
    %158 = vector.multi_reduction <add>, %157, %cst_53 [0] : vector<128x128xf32> to vector<128xf32>
    %159 = vector.shape_cast %158 : vector<128xf32> to vector<1x128xf32>
    %c1 = arith.constant 1 : index
    %c0_54 = arith.constant 0 : index
    %160 = vector.load %arg10[%c1, %c0_54] : memref<8x1xf32, #tpu.memory_space<vmem>>, vector<1x1xf32>
    %cst_55 = arith.constant 1.000000e-30 : f32
    %161 = vector.broadcast %cst_55 : f32 to vector<1x128xf32>
    %162 = arith.maximumf %159, %161 : vector<1x128xf32>
    %163 = math.rsqrt %162 : vector<1x128xf32>
    %cst_56 = arith.constant 1.000000e-30 : f32
    %164 = vector.broadcast %cst_56 : f32 to vector<1x128xf32>
    %165 = arith.maximumf %159, %164 : vector<1x128xf32>
    %166 = arith.mulf %165, %163 : vector<1x128xf32>
    %167 = arith.mulf %166, %152 : vector<1x128xf32>
    %cst_57 = arith.constant 1.000000e+00 : f32
    %168 = vector.broadcast %cst_57 : f32 to vector<1x128xf32>
    %169 = arith.mulf %168, %167 : vector<1x128xf32>
    %170 = math.tanh %169 : vector<1x128xf32>
    %cst_58 = arith.constant 1.000000e+00 : f32
    %171 = vector.broadcast %cst_58 : f32 to vector<1x128xf32>
    %172 = arith.mulf %170, %171 : vector<1x128xf32>
    %173 = arith.mulf %172, %163 : vector<1x128xf32>
    %174 = arith.mulf %172, %172 : vector<1x128xf32>
    %175 = arith.mulf %173, %156 : vector<1x128xf32>
    %cst_59 = arith.constant -2.000000e+00 : f32
    %176 = vector.broadcast %cst_59 : f32 to vector<1x128xf32>
    %177 = arith.mulf %176, %175 : vector<1x128xf32>
    %cst_60 = arith.constant 1.000000e+00 : f32
    %178 = vector.broadcast %cst_60 : f32 to vector<1x128xf32>
    %179 = arith.subf %178, %177 : vector<1x128xf32>
    %cst_61 = arith.constant -1.000000e+00 : f32
    %180 = vector.broadcast %cst_61 : f32 to vector<1x1xf32>
    %181 = arith.mulf %180, %160 : vector<1x1xf32>
    %182 = vector.broadcast %181 : vector<1x1xf32> to vector<1x128xf32>
    %183 = arith.subf %179, %182 : vector<1x128xf32>
    %cst_62 = arith.constant -1.000000e+00 : f32
    %184 = vector.broadcast %cst_62 : f32 to vector<1x128xf32>
    %185 = arith.mulf %184, %174 : vector<1x128xf32>
    %cst_63 = arith.constant 1.000000e+00 : f32
    %186 = vector.broadcast %cst_63 : f32 to vector<1x128xf32>
    %187 = arith.addf %186, %185 : vector<1x128xf32>
    %cst_64 = arith.constant -2.000000e+00 : f32
    %188 = vector.broadcast %cst_64 : f32 to vector<1x128xf32>
    %189 = arith.mulf %188, %175 : vector<1x128xf32>
    %cst_65 = arith.constant 1.000000e+00 : f32
    %190 = vector.broadcast %cst_65 : f32 to vector<1x128xf32>
    %191 = arith.subf %190, %189 : vector<1x128xf32>
    %cst_66 = arith.constant 1.000000e+00 : f32
    %192 = vector.broadcast %cst_66 : f32 to vector<1x128xf32>
    %193 = arith.mulf %192, %174 : vector<1x128xf32>
    %194 = vector.broadcast %160 : vector<1x1xf32> to vector<1x128xf32>
    %195 = arith.mulf %193, %194 : vector<1x128xf32>
    %196 = arith.addf %191, %195 : vector<1x128xf32>
    %cst_67 = arith.constant 1.000000e-15 : f32
    %197 = vector.broadcast %cst_67 : f32 to vector<1x128xf32>
    %198 = arith.maximumf %196, %197 : vector<1x128xf32>
    %cst_68 = arith.constant 1.000000e+00 : f32
    %199 = vector.broadcast %cst_68 : f32 to vector<1x128xf32>
    %200 = arith.divf %199, %198 : vector<1x128xf32>
    %201 = arith.mulf %183, %173 : vector<1x128xf32>
    %202 = arith.mulf %201, %200 : vector<1x128xf32>
    %203 = arith.mulf %187, %200 : vector<1x128xf32>
    %204 = arith.mulf %183, %183 : vector<1x128xf32>
    %205 = arith.mulf %204, %174 : vector<1x128xf32>
    %cst_69 = arith.constant 2.000000e+00 : f32
    %206 = vector.broadcast %cst_69 : f32 to vector<1x128xf32>
    %207 = arith.mulf %206, %183 : vector<1x128xf32>
    %208 = arith.mulf %207, %187 : vector<1x128xf32>
    %209 = arith.mulf %208, %175 : vector<1x128xf32>
    %210 = arith.addf %205, %209 : vector<1x128xf32>
    %211 = arith.mulf %187, %187 : vector<1x128xf32>
    %212 = vector.broadcast %160 : vector<1x1xf32> to vector<1x128xf32>
    %213 = arith.mulf %211, %212 : vector<1x128xf32>
    %214 = arith.addf %210, %213 : vector<1x128xf32>
    %215 = arith.mulf %200, %200 : vector<1x128xf32>
    %216 = arith.mulf %214, %215 : vector<1x128xf32>
    %cst_70 = arith.constant 1.000000e-30 : f32
    %217 = vector.broadcast %cst_70 : f32 to vector<1x128xf32>
    %218 = arith.maximumf %216, %217 : vector<1x128xf32>
    %219 = math.rsqrt %218 : vector<1x128xf32>
    %cst_71 = arith.constant 0.995999991 : f32
    %220 = vector.broadcast %cst_71 : f32 to vector<1x128xf32>
    %221 = arith.mulf %220, %219 : vector<1x128xf32>
    %cst_72 = arith.constant 1.000000e+00 : f32
    %222 = vector.broadcast %cst_72 : f32 to vector<1x128xf32>
    %223 = arith.minimumf %222, %221 : vector<1x128xf32>
    %224 = arith.mulf %216, %223 : vector<1x128xf32>
    %225 = arith.mulf %224, %223 : vector<1x128xf32>
    %226 = vector.broadcast %202 : vector<1x128xf32> to vector<128x128xf32>
    %227 = arith.mulf %226, %155 : vector<128x128xf32>
    %c0_73 = arith.constant 0 : index
    %c0_74 = arith.constant 0 : index
    %228 = vector.load %arg5[%c0_73, %c0_74] : memref<128x1xf32, #tpu.memory_space<vmem>>, vector<128x1xf32>
    %229 = vector.broadcast %203 : vector<1x128xf32> to vector<128x128xf32>
    %230 = vector.broadcast %228 : vector<128x1xf32> to vector<128x128xf32>
    %231 = arith.mulf %229, %230 : vector<128x128xf32>
    %232 = arith.addf %227, %231 : vector<128x128xf32>
    %233 = vector.broadcast %223 : vector<1x128xf32> to vector<128x128xf32>
    %234 = arith.mulf %232, %233 : vector<128x128xf32>
    %cst_75 = arith.constant 1.000000e-30 : f32
    %235 = vector.broadcast %cst_75 : f32 to vector<1x128xf32>
    %236 = arith.maximumf %225, %235 : vector<1x128xf32>
    %237 = math.rsqrt %236 : vector<1x128xf32>
    %cst_76 = arith.constant 1.000000e-30 : f32
    %238 = vector.broadcast %cst_76 : f32 to vector<1x128xf32>
    %239 = arith.maximumf %225, %238 : vector<1x128xf32>
    %240 = arith.mulf %239, %237 : vector<1x128xf32>
    %cst_77 = arith.constant 1.000000e+00 : f32
    %241 = vector.broadcast %cst_77 : f32 to vector<1x128xf32>
    %242 = arith.mulf %241, %240 : vector<1x128xf32>
    %cst_78 = arith.constant -0.99999988 : f32
    %cst_79 = arith.constant 0.99999988 : f32
    %243 = vector.broadcast %cst_78 : f32 to vector<1x128xf32>
    %244 = arith.maximumf %243, %242 : vector<1x128xf32>
    %245 = vector.broadcast %cst_79 : f32 to vector<1x128xf32>
    %246 = arith.minimumf %245, %244 : vector<1x128xf32>
    %cst_80 = arith.constant 1.000000e+00 : f32
    %247 = vector.broadcast %cst_80 : f32 to vector<1x128xf32>
    %248 = arith.addf %247, %246 : vector<1x128xf32>
    %cst_81 = arith.constant 1.000000e+00 : f32
    %249 = vector.broadcast %cst_81 : f32 to vector<1x128xf32>
    %250 = arith.subf %249, %246 : vector<1x128xf32>
    %251 = arith.divf %248, %250 : vector<1x128xf32>
    %252 = math.log %251 : vector<1x128xf32>
    %cst_82 = arith.constant 5.000000e-01 : f32
    %253 = vector.broadcast %cst_82 : f32 to vector<1x128xf32>
    %254 = arith.mulf %253, %252 : vector<1x128xf32>
    %255 = arith.mulf %254, %237 : vector<1x128xf32>
    %c0_83 = arith.constant 0 : index
    %c0_84 = arith.constant 0 : index
    %256 = vector.load %arg6[%c0_83, %c0_84] : memref<66x128xf32, #tpu.memory_space<vmem>>, vector<66x128xf32>
    %cst_85 = arith.constant dense<0.000000e+00> : vector<66x128xf32>
    %257 = tpu.matmul %256, %234, %cst_85 {dimension_numbers = #tpu.dot_dimension_numbers<[1], [0], [0], [1], [0, 0, 1, 1], [], []>} : vector<66x128xf32>, vector<128x128xf32>, vector<66x128xf32> -> vector<66x128xf32>
    %258 = vector.extract_strided_slice %257 {offsets = [0, 0], sizes = [64, 128], strides = [1, 1]} : vector<66x128xf32> to vector<64x128xf32>
    %259 = vector.extract_strided_slice %257 {offsets = [64, 0], sizes = [2, 128], strides = [1, 1]} : vector<66x128xf32> to vector<2x128xf32>
    %260 = vector.extract_strided_slice %257 {offsets = [0, 0], sizes = [32, 128], strides = [1, 1]} : vector<66x128xf32> to vector<32x128xf32>
    %261 = vector.extract_strided_slice %257 {offsets = [0, 0], sizes = [32, 128], strides = [1, 1]} : vector<66x128xf32> to vector<32x128xf32>
    %262 = arith.mulf %260, %261 : vector<32x128xf32>
    %cst_86 = arith.constant dense<0.000000e+00> : vector<128xf32>
    %263 = vector.multi_reduction <add>, %262, %cst_86 [0] : vector<32x128xf32> to vector<128xf32>
    %264 = vector.shape_cast %263 : vector<128xf32> to vector<1x128xf32>
    %265 = vector.extract_strided_slice %257 {offsets = [32, 0], sizes = [32, 128], strides = [1, 1]} : vector<66x128xf32> to vector<32x128xf32>
    %266 = vector.extract_strided_slice %257 {offsets = [32, 0], sizes = [32, 128], strides = [1, 1]} : vector<66x128xf32> to vector<32x128xf32>
    %267 = arith.mulf %265, %266 : vector<32x128xf32>
    %cst_87 = arith.constant dense<0.000000e+00> : vector<128xf32>
    %268 = vector.multi_reduction <add>, %267, %cst_87 [0] : vector<32x128xf32> to vector<128xf32>
    %269 = vector.shape_cast %268 : vector<128xf32> to vector<1x128xf32>
    %270 = tpu.concatenate %264, %269 in 0 : vector<1x128xf32>, vector<1x128xf32> -> vector<2x128xf32>
    %c2 = arith.constant 2 : index
    %c0_88 = arith.constant 0 : index
    %271 = vector.load %arg10[%c2, %c0_88] : memref<8x1xf32, #tpu.memory_space<vmem>>, vector<2x1xf32>
    %cst_89 = arith.constant 1.000000e-30 : f32
    %272 = vector.broadcast %cst_89 : f32 to vector<2x128xf32>
    %273 = arith.maximumf %270, %272 : vector<2x128xf32>
    %274 = math.rsqrt %273 : vector<2x128xf32>
    %cst_90 = arith.constant 1.000000e-30 : f32
    %275 = vector.broadcast %cst_90 : f32 to vector<2x128xf32>
    %276 = arith.maximumf %270, %275 : vector<2x128xf32>
    %277 = arith.mulf %276, %274 : vector<2x128xf32>
    %278 = vector.broadcast %255 : vector<1x128xf32> to vector<2x128xf32>
    %279 = arith.mulf %277, %278 : vector<2x128xf32>
    %cst_91 = arith.constant 1.000000e+00 : f32
    %280 = vector.broadcast %cst_91 : f32 to vector<2x128xf32>
    %281 = arith.mulf %280, %279 : vector<2x128xf32>
    %282 = math.tanh %281 : vector<2x128xf32>
    %cst_92 = arith.constant 1.000000e+00 : f32
    %283 = vector.broadcast %cst_92 : f32 to vector<2x128xf32>
    %284 = arith.mulf %282, %283 : vector<2x128xf32>
    %285 = arith.mulf %284, %274 : vector<2x128xf32>
    %286 = arith.mulf %284, %284 : vector<2x128xf32>
    %287 = arith.mulf %285, %259 : vector<2x128xf32>
    %cst_93 = arith.constant -2.000000e+00 : f32
    %288 = vector.broadcast %cst_93 : f32 to vector<2x128xf32>
    %289 = arith.mulf %288, %287 : vector<2x128xf32>
    %cst_94 = arith.constant 1.000000e+00 : f32
    %290 = vector.broadcast %cst_94 : f32 to vector<2x128xf32>
    %291 = arith.subf %290, %289 : vector<2x128xf32>
    %cst_95 = arith.constant -1.000000e+00 : f32
    %292 = vector.broadcast %cst_95 : f32 to vector<2x1xf32>
    %293 = arith.mulf %292, %271 : vector<2x1xf32>
    %294 = vector.broadcast %293 : vector<2x1xf32> to vector<2x128xf32>
    %295 = arith.subf %291, %294 : vector<2x128xf32>
    %cst_96 = arith.constant -1.000000e+00 : f32
    %296 = vector.broadcast %cst_96 : f32 to vector<2x128xf32>
    %297 = arith.mulf %296, %286 : vector<2x128xf32>
    %cst_97 = arith.constant 1.000000e+00 : f32
    %298 = vector.broadcast %cst_97 : f32 to vector<2x128xf32>
    %299 = arith.addf %298, %297 : vector<2x128xf32>
    %cst_98 = arith.constant -2.000000e+00 : f32
    %300 = vector.broadcast %cst_98 : f32 to vector<2x128xf32>
    %301 = arith.mulf %300, %287 : vector<2x128xf32>
    %cst_99 = arith.constant 1.000000e+00 : f32
    %302 = vector.broadcast %cst_99 : f32 to vector<2x128xf32>
    %303 = arith.subf %302, %301 : vector<2x128xf32>
    %cst_100 = arith.constant 1.000000e+00 : f32
    %304 = vector.broadcast %cst_100 : f32 to vector<2x128xf32>
    %305 = arith.mulf %304, %286 : vector<2x128xf32>
    %306 = vector.broadcast %271 : vector<2x1xf32> to vector<2x128xf32>
    %307 = arith.mulf %305, %306 : vector<2x128xf32>
    %308 = arith.addf %303, %307 : vector<2x128xf32>
    %cst_101 = arith.constant 1.000000e-15 : f32
    %309 = vector.broadcast %cst_101 : f32 to vector<2x128xf32>
    %310 = arith.maximumf %308, %309 : vector<2x128xf32>
    %cst_102 = arith.constant 1.000000e+00 : f32
    %311 = vector.broadcast %cst_102 : f32 to vector<2x128xf32>
    %312 = arith.divf %311, %310 : vector<2x128xf32>
    %313 = arith.mulf %295, %285 : vector<2x128xf32>
    %314 = arith.mulf %313, %312 : vector<2x128xf32>
    %315 = arith.mulf %299, %312 : vector<2x128xf32>
    %316 = arith.mulf %295, %295 : vector<2x128xf32>
    %317 = arith.mulf %316, %286 : vector<2x128xf32>
    %cst_103 = arith.constant 2.000000e+00 : f32
    %318 = vector.broadcast %cst_103 : f32 to vector<2x128xf32>
    %319 = arith.mulf %318, %295 : vector<2x128xf32>
    %320 = arith.mulf %319, %299 : vector<2x128xf32>
    %321 = arith.mulf %320, %287 : vector<2x128xf32>
    %322 = arith.addf %317, %321 : vector<2x128xf32>
    %323 = arith.mulf %299, %299 : vector<2x128xf32>
    %324 = vector.broadcast %271 : vector<2x1xf32> to vector<2x128xf32>
    %325 = arith.mulf %323, %324 : vector<2x128xf32>
    %326 = arith.addf %322, %325 : vector<2x128xf32>
    %327 = arith.mulf %312, %312 : vector<2x128xf32>
    %328 = arith.mulf %326, %327 : vector<2x128xf32>
    %cst_104 = arith.constant 1.000000e-30 : f32
    %329 = vector.broadcast %cst_104 : f32 to vector<2x128xf32>
    %330 = arith.maximumf %328, %329 : vector<2x128xf32>
    %331 = math.rsqrt %330 : vector<2x128xf32>
    %cst_105 = arith.constant 0.995999991 : f32
    %332 = vector.broadcast %cst_105 : f32 to vector<2x128xf32>
    %333 = arith.mulf %332, %331 : vector<2x128xf32>
    %cst_106 = arith.constant 1.000000e+00 : f32
    %334 = vector.broadcast %cst_106 : f32 to vector<2x128xf32>
    %335 = arith.minimumf %334, %333 : vector<2x128xf32>
    %336 = tpu.iota {dimensions = array<i32: 0>} : vector<64x128xi32>
    %c32_i32 = arith.constant 32 : i32
    %337 = vector.broadcast %c32_i32 : i32 to vector<64x128xi32>
    %338 = arith.cmpi slt, %336, %337 : vector<64x128xi32>
    %339 = vector.extract_strided_slice %314 {offsets = [0, 0], sizes = [1, 128], strides = [1, 1]} : vector<2x128xf32> to vector<1x128xf32>
    %340 = vector.extract_strided_slice %314 {offsets = [1, 0], sizes = [1, 128], strides = [1, 1]} : vector<2x128xf32> to vector<1x128xf32>
    %341 = vector.shape_cast %339 : vector<1x128xf32> to vector<1x128xf32>
    %342 = vector.broadcast %341 : vector<1x128xf32> to vector<64x128xf32>
    %343 = vector.shape_cast %340 : vector<1x128xf32> to vector<1x128xf32>
    %344 = vector.broadcast %343 : vector<1x128xf32> to vector<64x128xf32>
    %345 = arith.select %338, %342, %344 : vector<64x128xi1>, vector<64x128xf32>
    %346 = vector.extract_strided_slice %315 {offsets = [0, 0], sizes = [1, 128], strides = [1, 1]} : vector<2x128xf32> to vector<1x128xf32>
    %347 = vector.extract_strided_slice %315 {offsets = [1, 0], sizes = [1, 128], strides = [1, 1]} : vector<2x128xf32> to vector<1x128xf32>
    %348 = vector.shape_cast %346 : vector<1x128xf32> to vector<1x128xf32>
    %349 = vector.broadcast %348 : vector<1x128xf32> to vector<64x128xf32>
    %350 = vector.shape_cast %347 : vector<1x128xf32> to vector<1x128xf32>
    %351 = vector.broadcast %350 : vector<1x128xf32> to vector<64x128xf32>
    %352 = arith.select %338, %349, %351 : vector<64x128xi1>, vector<64x128xf32>
    %353 = vector.extract_strided_slice %335 {offsets = [0, 0], sizes = [1, 128], strides = [1, 1]} : vector<2x128xf32> to vector<1x128xf32>
    %354 = vector.extract_strided_slice %335 {offsets = [1, 0], sizes = [1, 128], strides = [1, 1]} : vector<2x128xf32> to vector<1x128xf32>
    %355 = vector.shape_cast %353 : vector<1x128xf32> to vector<1x128xf32>
    %356 = vector.broadcast %355 : vector<1x128xf32> to vector<64x128xf32>
    %357 = vector.shape_cast %354 : vector<1x128xf32> to vector<1x128xf32>
    %358 = vector.broadcast %357 : vector<1x128xf32> to vector<64x128xf32>
    %359 = arith.select %338, %356, %358 : vector<64x128xi1>, vector<64x128xf32>
    %360 = arith.mulf %345, %258 : vector<64x128xf32>
    %c0_107 = arith.constant 0 : index
    %c0_108 = arith.constant 0 : index
    %361 = vector.load %arg7[%c0_107, %c0_108] : memref<64x1xf32, #tpu.memory_space<vmem>>, vector<64x1xf32>
    %362 = vector.broadcast %361 : vector<64x1xf32> to vector<64x128xf32>
    %363 = arith.mulf %352, %362 : vector<64x128xf32>
    %364 = arith.addf %360, %363 : vector<64x128xf32>
    %365 = arith.mulf %364, %359 : vector<64x128xf32>
    %cst_109 = arith.constant 0.000000e+00 : f32
    %366 = vector.broadcast %cst_109 : f32 to vector<64x128xf32>
    %367 = arith.maximumf %365, %366 : vector<64x128xf32>
    %368 = vector.extract_strided_slice %367 {offsets = [0, 0], sizes = [32, 128], strides = [1, 1]} : vector<64x128xf32> to vector<32x128xf32>
    %369 = vector.extract_strided_slice %367 {offsets = [0, 0], sizes = [32, 128], strides = [1, 1]} : vector<64x128xf32> to vector<32x128xf32>
    %370 = arith.mulf %368, %369 : vector<32x128xf32>
    %cst_110 = arith.constant dense<0.000000e+00> : vector<128xf32>
    %371 = vector.multi_reduction <add>, %370, %cst_110 [0] : vector<32x128xf32> to vector<128xf32>
    %372 = vector.shape_cast %371 : vector<128xf32> to vector<1x128xf32>
    %373 = vector.extract_strided_slice %367 {offsets = [32, 0], sizes = [32, 128], strides = [1, 1]} : vector<64x128xf32> to vector<32x128xf32>
    %374 = vector.extract_strided_slice %367 {offsets = [32, 0], sizes = [32, 128], strides = [1, 1]} : vector<64x128xf32> to vector<32x128xf32>
    %375 = arith.mulf %373, %374 : vector<32x128xf32>
    %cst_111 = arith.constant dense<0.000000e+00> : vector<128xf32>
    %376 = vector.multi_reduction <add>, %375, %cst_111 [0] : vector<32x128xf32> to vector<128xf32>
    %377 = vector.shape_cast %376 : vector<128xf32> to vector<1x128xf32>
    %378 = tpu.concatenate %372, %377 in 0 : vector<1x128xf32>, vector<1x128xf32> -> vector<2x128xf32>
    %cst_112 = arith.constant 1.000000e-30 : f32
    %379 = vector.broadcast %cst_112 : f32 to vector<2x128xf32>
    %380 = arith.maximumf %378, %379 : vector<2x128xf32>
    %381 = math.rsqrt %380 : vector<2x128xf32>
    %cst_113 = arith.constant 1.000000e-30 : f32
    %382 = vector.broadcast %cst_113 : f32 to vector<2x128xf32>
    %383 = arith.maximumf %378, %382 : vector<2x128xf32>
    %384 = arith.mulf %383, %381 : vector<2x128xf32>
    %cst_114 = arith.constant 1.000000e+00 : f32
    %385 = vector.broadcast %cst_114 : f32 to vector<2x128xf32>
    %386 = arith.mulf %385, %384 : vector<2x128xf32>
    %cst_115 = arith.constant -0.99999988 : f32
    %cst_116 = arith.constant 0.99999988 : f32
    %387 = vector.broadcast %cst_115 : f32 to vector<2x128xf32>
    %388 = arith.maximumf %387, %386 : vector<2x128xf32>
    %389 = vector.broadcast %cst_116 : f32 to vector<2x128xf32>
    %390 = arith.minimumf %389, %388 : vector<2x128xf32>
    %cst_117 = arith.constant 1.000000e+00 : f32
    %391 = vector.broadcast %cst_117 : f32 to vector<2x128xf32>
    %392 = arith.addf %391, %390 : vector<2x128xf32>
    %cst_118 = arith.constant 1.000000e+00 : f32
    %393 = vector.broadcast %cst_118 : f32 to vector<2x128xf32>
    %394 = arith.subf %393, %390 : vector<2x128xf32>
    %395 = arith.divf %392, %394 : vector<2x128xf32>
    %396 = math.log %395 : vector<2x128xf32>
    %cst_119 = arith.constant 5.000000e-01 : f32
    %397 = vector.broadcast %cst_119 : f32 to vector<2x128xf32>
    %398 = arith.mulf %397, %396 : vector<2x128xf32>
    %399 = arith.mulf %398, %381 : vector<2x128xf32>
    %c0_120 = arith.constant 0 : index
    %c0_121 = arith.constant 0 : index
    %400 = vector.load %arg8[%c0_120, %c0_121] : memref<8x64xf32, #tpu.memory_space<vmem>>, vector<8x64xf32>
    %cst_122 = arith.constant dense<0.000000e+00> : vector<8x128xf32>
    %401 = tpu.matmul %400, %367, %cst_122 {dimension_numbers = #tpu.dot_dimension_numbers<[1], [0], [0], [1], [0, 0, 1, 1], [], []>} : vector<8x64xf32>, vector<64x128xf32>, vector<8x128xf32> -> vector<8x128xf32>
    %402 = vector.extract_strided_slice %401 {offsets = [0, 0], sizes = [6, 128], strides = [1, 1]} : vector<8x128xf32> to vector<6x128xf32>
    %403 = vector.extract_strided_slice %401 {offsets = [6, 0], sizes = [2, 128], strides = [1, 1]} : vector<8x128xf32> to vector<2x128xf32>
    %404 = arith.mulf %402, %402 : vector<6x128xf32>
    %cst_123 = arith.constant dense<0.000000e+00> : vector<128xf32>
    %405 = vector.multi_reduction <add>, %404, %cst_123 [0] : vector<6x128xf32> to vector<128xf32>
    %406 = vector.shape_cast %405 : vector<128xf32> to vector<1x128xf32>
    %407 = vector.extract_strided_slice %401 {offsets = [0, 0], sizes = [1, 128], strides = [1, 1]} : vector<8x128xf32> to vector<1x128xf32>
    %408 = vector.extract_strided_slice %401 {offsets = [0, 0], sizes = [1, 128], strides = [1, 1]} : vector<8x128xf32> to vector<1x128xf32>
    %409 = arith.mulf %407, %408 : vector<1x128xf32>
    %410 = arith.subf %406, %409 : vector<1x128xf32>
    %411 = tpu.concatenate %409, %410 in 0 : vector<1x128xf32>, vector<1x128xf32> -> vector<2x128xf32>
    %c4 = arith.constant 4 : index
    %c0_124 = arith.constant 0 : index
    %412 = vector.load %arg10[%c4, %c0_124] : memref<8x1xf32, #tpu.memory_space<vmem>>, vector<2x1xf32>
    %cst_125 = arith.constant 1.000000e-30 : f32
    %413 = vector.broadcast %cst_125 : f32 to vector<2x128xf32>
    %414 = arith.maximumf %411, %413 : vector<2x128xf32>
    %415 = math.rsqrt %414 : vector<2x128xf32>
    %cst_126 = arith.constant 1.000000e-30 : f32
    %416 = vector.broadcast %cst_126 : f32 to vector<2x128xf32>
    %417 = arith.maximumf %411, %416 : vector<2x128xf32>
    %418 = arith.mulf %417, %415 : vector<2x128xf32>
    %419 = arith.mulf %418, %399 : vector<2x128xf32>
    %cst_127 = arith.constant 1.000000e+00 : f32
    %420 = vector.broadcast %cst_127 : f32 to vector<2x128xf32>
    %421 = arith.mulf %420, %419 : vector<2x128xf32>
    %422 = math.tanh %421 : vector<2x128xf32>
    %cst_128 = arith.constant 1.000000e+00 : f32
    %423 = vector.broadcast %cst_128 : f32 to vector<2x128xf32>
    %424 = arith.mulf %422, %423 : vector<2x128xf32>
    %425 = arith.mulf %424, %415 : vector<2x128xf32>
    %426 = arith.mulf %424, %424 : vector<2x128xf32>
    %427 = arith.mulf %425, %403 : vector<2x128xf32>
    %cst_129 = arith.constant -2.000000e+00 : f32
    %428 = vector.broadcast %cst_129 : f32 to vector<2x128xf32>
    %429 = arith.mulf %428, %427 : vector<2x128xf32>
    %cst_130 = arith.constant 1.000000e+00 : f32
    %430 = vector.broadcast %cst_130 : f32 to vector<2x128xf32>
    %431 = arith.subf %430, %429 : vector<2x128xf32>
    %cst_131 = arith.constant -1.000000e+00 : f32
    %432 = vector.broadcast %cst_131 : f32 to vector<2x1xf32>
    %433 = arith.mulf %432, %412 : vector<2x1xf32>
    %434 = vector.broadcast %433 : vector<2x1xf32> to vector<2x128xf32>
    %435 = arith.subf %431, %434 : vector<2x128xf32>
    %cst_132 = arith.constant -1.000000e+00 : f32
    %436 = vector.broadcast %cst_132 : f32 to vector<2x128xf32>
    %437 = arith.mulf %436, %426 : vector<2x128xf32>
    %cst_133 = arith.constant 1.000000e+00 : f32
    %438 = vector.broadcast %cst_133 : f32 to vector<2x128xf32>
    %439 = arith.addf %438, %437 : vector<2x128xf32>
    %cst_134 = arith.constant -2.000000e+00 : f32
    %440 = vector.broadcast %cst_134 : f32 to vector<2x128xf32>
    %441 = arith.mulf %440, %427 : vector<2x128xf32>
    %cst_135 = arith.constant 1.000000e+00 : f32
    %442 = vector.broadcast %cst_135 : f32 to vector<2x128xf32>
    %443 = arith.subf %442, %441 : vector<2x128xf32>
    %cst_136 = arith.constant 1.000000e+00 : f32
    %444 = vector.broadcast %cst_136 : f32 to vector<2x128xf32>
    %445 = arith.mulf %444, %426 : vector<2x128xf32>
    %446 = vector.broadcast %412 : vector<2x1xf32> to vector<2x128xf32>
    %447 = arith.mulf %445, %446 : vector<2x128xf32>
    %448 = arith.addf %443, %447 : vector<2x128xf32>
    %cst_137 = arith.constant 1.000000e-15 : f32
    %449 = vector.broadcast %cst_137 : f32 to vector<2x128xf32>
    %450 = arith.maximumf %448, %449 : vector<2x128xf32>
    %cst_138 = arith.constant 1.000000e+00 : f32
    %451 = vector.broadcast %cst_138 : f32 to vector<2x128xf32>
    %452 = arith.divf %451, %450 : vector<2x128xf32>
    %453 = arith.mulf %435, %425 : vector<2x128xf32>
    %454 = arith.mulf %453, %452 : vector<2x128xf32>
    %455 = arith.mulf %439, %452 : vector<2x128xf32>
    %456 = arith.mulf %435, %435 : vector<2x128xf32>
    %457 = arith.mulf %456, %426 : vector<2x128xf32>
    %cst_139 = arith.constant 2.000000e+00 : f32
    %458 = vector.broadcast %cst_139 : f32 to vector<2x128xf32>
    %459 = arith.mulf %458, %435 : vector<2x128xf32>
    %460 = arith.mulf %459, %439 : vector<2x128xf32>
    %461 = arith.mulf %460, %427 : vector<2x128xf32>
    %462 = arith.addf %457, %461 : vector<2x128xf32>
    %463 = arith.mulf %439, %439 : vector<2x128xf32>
    %464 = vector.broadcast %412 : vector<2x1xf32> to vector<2x128xf32>
    %465 = arith.mulf %463, %464 : vector<2x128xf32>
    %466 = arith.addf %462, %465 : vector<2x128xf32>
    %467 = arith.mulf %452, %452 : vector<2x128xf32>
    %468 = arith.mulf %466, %467 : vector<2x128xf32>
    %cst_140 = arith.constant 1.000000e-30 : f32
    %469 = vector.broadcast %cst_140 : f32 to vector<2x128xf32>
    %470 = arith.maximumf %468, %469 : vector<2x128xf32>
    %471 = math.rsqrt %470 : vector<2x128xf32>
    %cst_141 = arith.constant 0.995999991 : f32
    %472 = vector.broadcast %cst_141 : f32 to vector<2x128xf32>
    %473 = arith.mulf %472, %471 : vector<2x128xf32>
    %cst_142 = arith.constant 1.000000e+00 : f32
    %474 = vector.broadcast %cst_142 : f32 to vector<2x128xf32>
    %475 = arith.minimumf %474, %473 : vector<2x128xf32>
    %476 = tpu.iota {dimensions = array<i32: 0>} : vector<6x128xi32>
    %c1_i32 = arith.constant 1 : i32
    %477 = vector.broadcast %c1_i32 : i32 to vector<6x128xi32>
    %478 = arith.cmpi slt, %476, %477 : vector<6x128xi32>
    %479 = vector.extract_strided_slice %454 {offsets = [0, 0], sizes = [1, 128], strides = [1, 1]} : vector<2x128xf32> to vector<1x128xf32>
    %480 = vector.extract_strided_slice %454 {offsets = [1, 0], sizes = [1, 128], strides = [1, 1]} : vector<2x128xf32> to vector<1x128xf32>
    %481 = vector.shape_cast %479 : vector<1x128xf32> to vector<1x128xf32>
    %482 = vector.broadcast %481 : vector<1x128xf32> to vector<6x128xf32>
    %483 = vector.shape_cast %480 : vector<1x128xf32> to vector<1x128xf32>
    %484 = vector.broadcast %483 : vector<1x128xf32> to vector<6x128xf32>
    %485 = arith.select %478, %482, %484 : vector<6x128xi1>, vector<6x128xf32>
    %486 = vector.extract_strided_slice %455 {offsets = [0, 0], sizes = [1, 128], strides = [1, 1]} : vector<2x128xf32> to vector<1x128xf32>
    %487 = vector.extract_strided_slice %455 {offsets = [1, 0], sizes = [1, 128], strides = [1, 1]} : vector<2x128xf32> to vector<1x128xf32>
    %488 = vector.shape_cast %486 : vector<1x128xf32> to vector<1x128xf32>
    %489 = vector.broadcast %488 : vector<1x128xf32> to vector<6x128xf32>
    %490 = vector.shape_cast %487 : vector<1x128xf32> to vector<1x128xf32>
    %491 = vector.broadcast %490 : vector<1x128xf32> to vector<6x128xf32>
    %492 = arith.select %478, %489, %491 : vector<6x128xi1>, vector<6x128xf32>
    %493 = vector.extract_strided_slice %475 {offsets = [0, 0], sizes = [1, 128], strides = [1, 1]} : vector<2x128xf32> to vector<1x128xf32>
    %494 = vector.extract_strided_slice %475 {offsets = [1, 0], sizes = [1, 128], strides = [1, 1]} : vector<2x128xf32> to vector<1x128xf32>
    %495 = vector.shape_cast %493 : vector<1x128xf32> to vector<1x128xf32>
    %496 = vector.broadcast %495 : vector<1x128xf32> to vector<6x128xf32>
    %497 = vector.shape_cast %494 : vector<1x128xf32> to vector<1x128xf32>
    %498 = vector.broadcast %497 : vector<1x128xf32> to vector<6x128xf32>
    %499 = arith.select %478, %496, %498 : vector<6x128xi1>, vector<6x128xf32>
    %500 = arith.mulf %485, %402 : vector<6x128xf32>
    %c0_143 = arith.constant 0 : index
    %c0_144 = arith.constant 0 : index
    %501 = vector.load %arg9[%c0_143, %c0_144] : memref<6x1xf32, #tpu.memory_space<vmem>>, vector<6x1xf32>
    %502 = vector.broadcast %501 : vector<6x1xf32> to vector<6x128xf32>
    %503 = arith.mulf %492, %502 : vector<6x128xf32>
    %504 = arith.addf %500, %503 : vector<6x128xf32>
    %505 = arith.mulf %504, %499 : vector<6x128xf32>
    %c0_145 = arith.constant 0 : index
    %c0_146 = arith.constant 0 : index
    %506 = vector.load %arg11[%c0_145, %c0_146] : memref<6x128xf32, #tpu.memory_space<vmem>>, vector<6x128xf32>
    tpu.vector_store %arg11[%c0_145, %c0_146], %505 {strides = array<i32>} : memref<6x128xf32, #tpu.memory_space<vmem>>, vector<6x128xf32>,
    return
  }
  func.func @transform_0(%arg0: i32) -> (i32, i32) {
    %c0_i32 = arith.constant 0 : i32
    %c0_i32_0 = arith.constant 0 : i32
    return %c0_i32, %arg0 : i32, i32
  }
  func.func @transform_1(%arg0: i32) -> (i32, i32) {
    %c0_i32 = arith.constant 0 : i32
    %c0_i32_0 = arith.constant 0 : i32
    %c0_i32_1 = arith.constant 0 : i32
    return %c0_i32, %c0_i32_0 : i32, i32
  }
  func.func @transform_2(%arg0: i32) -> (i32, i32) {
    %c0_i32 = arith.constant 0 : i32
    %c0_i32_0 = arith.constant 0 : i32
    %c0_i32_1 = arith.constant 0 : i32
    return %c0_i32, %c0_i32_0 : i32, i32
  }
  func.func @transform_3(%arg0: i32) -> (i32, i32) {
    %c0_i32 = arith.constant 0 : i32
    %c0_i32_0 = arith.constant 0 : i32
    %c0_i32_1 = arith.constant 0 : i32
    return %c0_i32, %c0_i32_0 : i32, i32
  }
  func.func @transform_4(%arg0: i32) -> (i32, i32) {
    %c0_i32 = arith.constant 0 : i32
    %c0_i32_0 = arith.constant 0 : i32
    %c0_i32_1 = arith.constant 0 : i32
    return %c0_i32, %c0_i32_0 : i32, i32
  }
  func.func @transform_5(%arg0: i32) -> (i32, i32) {
    %c0_i32 = arith.constant 0 : i32
    %c0_i32_0 = arith.constant 0 : i32
    %c0_i32_1 = arith.constant 0 : i32
    return %c0_i32, %c0_i32_0 : i32, i32
  }
  func.func @transform_6(%arg0: i32) -> (i32, i32) {
    %c0_i32 = arith.constant 0 : i32
    %c0_i32_0 = arith.constant 0 : i32
    %c0_i32_1 = arith.constant 0 : i32
    return %c0_i32, %c0_i32_0 : i32, i32
  }
  func.func @transform_7(%arg0: i32) -> (i32, i32) {
    %c0_i32 = arith.constant 0 : i32
    %c0_i32_0 = arith.constant 0 : i32
    %c0_i32_1 = arith.constant 0 : i32
    return %c0_i32, %c0_i32_0 : i32, i32
  }
  func.func @transform_8(%arg0: i32) -> (i32, i32) {
    %c0_i32 = arith.constant 0 : i32
    %c0_i32_0 = arith.constant 0 : i32
    %c0_i32_1 = arith.constant 0 : i32
    return %c0_i32, %c0_i32_0 : i32, i32
  }
  func.func @transform_9(%arg0: i32) -> (i32, i32) {
    %c0_i32 = arith.constant 0 : i32
    %c0_i32_0 = arith.constant 0 : i32
    %c0_i32_1 = arith.constant 0 : i32
    return %c0_i32, %c0_i32_0 : i32, i32
  }
  func.func @transform_10(%arg0: i32) -> (i32, i32) {
    %c0_i32 = arith.constant 0 : i32
    %c0_i32_0 = arith.constant 0 : i32
    return %c0_i32, %arg0 : i32, i32
  }
}

</mosaic_0001>

<bundles_post_ra>
// kernel: tpu_custom_call.1
= control target key start
LH: loop header
LB: loop body
LE: loop exit
PB: predicated region body
PF: predicated region fallthrough
CT: control target
= control target key end

     0   :  { %v1725_v2 = vmov 0.0   ;;  %vm1726_vm0 = vmmov 0   ;;  %v1727_v5 = vmov 0   ;;  %s2355_s0 = inlined_call_operand.vmem [shape: f32[16,128], index: 0, kind: input, shape index: {}]   ;;  %s2356_s1 = inlined_call_operand.vmem [shape: f32[33,16], index: 1, kind: input, shape index: {}]   ;;  %s2357_s2 = inlined_call_operand.vmem [shape: f32[32,1], index: 2, kind: input, shape index: {}]   ;;  %s2358_s3 = inlined_call_operand.vmem [shape: f32[129,32], index: 3, kind: input, shape index: {}]   ;;  %s2359_s4 = inlined_call_operand.vmem [shape: f32[128,1], index: 4, kind: input, shape index: {}]   ;;  %s2360_s5 = inlined_call_operand.vmem [shape: f32[66,128], index: 5, kind: input, shape index: {}]   ;;  %s2361_s6 = inlined_call_operand.vmem [shape: f32[64,1], index: 6, kind: input, shape index: {}]   ;;  %s2362_s7 = inlined_call_operand.vmem [shape: f32[8,64], index: 7, kind: input, shape index: {}]   ;;  %s2363_s8 = inlined_call_operand.vmem [shape: f32[6,1], index: 8, kind: input, shape index: {}]   ;;  %s2364_s9 = inlined_call_operand.vmem [shape: f32[8,1], index: 9, kind: input, shape index: {}]   ;;  %s2365_s10 = inlined_call_operand.hbm [shape: f32[6,128], index: 10, kind: output, shape index: {}]  }
   0x1   :  { %v1787_v0 = vld [vmem:[%s2355_s0] sm:$0xff]  ;;  %v1792_v1 = vld [vmem:[%s2355_s0 + $0x8] sm:$0xff]  ;;  %1479 = vmatprep.subr.mxu0 %v1725_v2  ;;  %1483 = vmatprep.mubr.msk.f32.mxu0 %vm1726_vm0, %v1725_v2  ;;  %v260_v10 = vld [vmem:[%s2357_s2 + $0x18] sm:$0xff] }
   0x2   :  { %v38_v3 = vmul.f32 %v1787_v0, %v1787_v0  ;;  %v39_v4 = vmul.f32 %v1792_v1, %v1792_v1  ;;  %1639 = vset.pattern.permute.xlu0 %v1727_v5  ;;  %v199_v6 = vld [vmem:[%s2364_s9] sm:$0x1]  ;;  %1640 = vset.pattern.permute.xlu1 %v1727_v5  ;;  %v259_v12 = vld [vmem:[%s2357_s2 + $0x10] sm:$0xff]  ;;  %v258_v13 = vld [vmem:[%s2357_s2 + $0x8] sm:$0xff] }
   0x3   :  { %221 = vperm.xlu0 %1639, %v199_v6   ;;  %v210_v8 = vmul.f32 -1.0, %v199_v6  ;;  %1498 = vmatprep.subr.mxu1 %v1725_v2  ;;  %v257_v16 = vld [vmem:[%s2357_s2] sm:$0xff] }
   0x4   :  { %v40_v7 = vadd.f32 %v39_v4, %v38_v3  ;;  %1506 = vmatprep.mubr.msk.f32.mxu1 %vm1726_vm0, %v1725_v2  ;;  %282 = vperm.xlu1 %1640, %v260_v10   ;;  %v570_v17 = vld [vmem:[%s2364_s9 + $0x1] sm:$0x1] }
   0x6   :  { %v41_v9 = vrot.slane %v40_v7, 4 }
   0x7   :  { %213 = vperm.xlu0 %1639, %v210_v8  }
   0x8   :  { %v42_v11 = vadd.f32 %v41_v9, %v40_v7  ;;  %277 = vperm.xlu1 %1640, %v259_v12  }
   0xa   :  { %v43_v14 = vrot.slane %v42_v11, 2 }
   0xb   :  { %272 = vperm.xlu0 %1639, %v258_v13  }
   0xc   :  { %v44_v15 = vadd.f32 %v43_v14, %v42_v11 }
   0xe   :  { %v45_v18 = vrot.slane %v44_v15, 1 }
   0xf   :  { %15 = vsyncpa [#allocation3], 0  ;;  %v581_v19 = vmul.f32 -1.0, %v570_v17  ;;  %267 = vperm.xlu1 %1640, %v257_v16   ;;  %592 = vperm.xlu0 %1639, %v570_v17   ;;  %v655_v21 = vld [vmem:[%s2359_s4 + $0x78] sm:$0xff]  ;;  %v654_v23 = vld [vmem:[%s2359_s4 + $0x70] sm:$0xff]  ;;  %vm80_vm1 = vcmask 130048  }
  0x10   :  { %v46_v20 = vadd.f32 %v45_v18, %v44_v15  ;;  %v653_v24 = vld [vmem:[%s2359_s4 + $0x68] sm:$0xff]  ;;  %v652_v25 = vld [vmem:[%s2359_s4 + $0x60] sm:$0xff]  ;;  %v651_v26 = vld [vmem:[%s2359_s4 + $0x58] sm:$0xff]  ;;  %vm331_vm2 = vcmask 261120   ;;  %vm950_vm3 = vcmask 1040384   ;;  %vm1198_vm4 = vcmask 523264  }
  0x11   :  { %v650_v27 = vld [vmem:[%s2359_s4 + $0x50] sm:$0xff]  ;;  %v649_v28 = vld [vmem:[%s2359_s4 + $0x48] sm:$0xff]  ;;  %v648_v29 = vld [vmem:[%s2359_s4 + $0x40] sm:$0xff]  ;;  %vm1273_vm5 = vcmask 1045504  }
  0x12   :  { %v47_v22 = vmax.f32 %v46_v20, 1e-30  ;;  %v647_v31 = vld [vmem:[%s2359_s4 + $0x38] sm:$0xff]  ;;  %v646_v33 = vld [vmem:[%s2359_s4 + $0x30] sm:$0xff]  ;;  %v645_v34 = vld [vmem:[%s2359_s4 + $0x28] sm:$0xff] }
  0x13   :  { %584 = vperm.xlu1 %1640, %v581_v19   ;;  %737 = vperm.xlu0 %1639, %v655_v21   ;;  %v644_v35 = vld [vmem:[%s2359_s4 + $0x20] sm:$0xff]  ;;  %v643_v36 = vld [vmem:[%s2359_s4 + $0x18] sm:$0xff]  ;;  %v642_v37 = vld [vmem:[%s2359_s4 + $0x10] sm:$0xff] }
  0x14   :  { %1641 = vrsqrt.f32 %v47_v22  ;;  %v641_v38 = vld [vmem:[%s2359_s4 + $0x8] sm:$0xff]  ;;  %v640_v39 = vld [vmem:[%s2359_s4] sm:$0xff]  ;;  %v1084_v45 = vld [vmem:[%s2361_s6 + $0x38] sm:$0xff] }
  0x15   :  { %v952_v41 = vld [vmem:[%s2364_s9 + $0x2] sm:$0x3]  ;;  %v1083_v46 = vld [vmem:[%s2361_s6 + $0x30] sm:$0xff]  ;;  %v1082_v47 = vld [vmem:[%s2361_s6 + $0x28] sm:$0xff] }
  0x16   :  { %v967_v43 = vmul.f32 -1.0, %v952_v41  ;;  %v1081_v48 = vld [vmem:[%s2361_s6 + $0x20] sm:$0xff]  ;;  %v1080_v49 = vld [vmem:[%s2361_s6 + $0x18] sm:$0xff]  ;;  %v1079_v50 = vld [vmem:[%s2361_s6 + $0x10] sm:$0xff] }
  0x17   :  { %732 = vperm.xlu1 %1640, %v654_v23   ;;  %727 = vperm.xlu0 %1639, %v653_v24   ;;  %v1078_v51 = vld [vmem:[%s2361_s6 + $0x8] sm:$0xff]  ;;  %v1077_v55 = vld [vmem:[%s2361_s6] sm:$0xff]  ;;  %v78_v5 = vld [vmem:[%s2356_s1 + $0x18] sm:$0xff] }
  0x18   :  { %v1286_v56 = vld [vmem:[%s2364_s9 + $0x4] sm:$0x3]  ;;  %v79_v6 = vld [vmem:[%s2356_s1 + $0x20] sm:$0x1] }
  0x19   :  { %v1300_v58 = vmul.f32 -1.0, %v1286_v56  ;;  %v1366_v61 = vld [vmem:[%s2363_s8] sm:$0x3f] }
  0x1a   :  { %v75_v4 = vld [vmem:[%s2356_s1] sm:$0xff] }
  0x1b   :  { %722 = vperm.xlu1 %1640, %v652_v25   ;;  %717 = vperm.xlu0 %1639, %v651_v26  }
  0x1f   :  { %712 = vperm.xlu1 %1640, %v650_v27   ;;  %707 = vperm.xlu0 %1639, %v649_v28  }
  0x21   :  { %v1642_v30 = vpop.eup %1641 }
  0x22   :  { %v49_v32 = vmul.f32 %v1642_v30, %v47_v22 }
  0x23   :  { %702 = vperm.xlu1 %1640, %v648_v29   ;;  %697 = vperm.xlu0 %1639, %v647_v31  }
  0x24   :  { %1643 = vtanh.f32 %v49_v32 }
  0x27   :  { %692 = vperm.xlu1 %1640, %v646_v33   ;;  %687 = vperm.xlu0 %1639, %v645_v34  }
  0x2b   :  { %682 = vperm.xlu1 %1640, %v644_v35   ;;  %677 = vperm.xlu0 %1639, %v643_v36  }
  0x2f   :  { %672 = vperm.xlu1 %1640, %v642_v37   ;;  %667 = vperm.xlu0 %1639, %v641_v38  }
  0x31   :  { %v1644_v40 = vpop.eup %1643 }
  0x32   :  { %v51_v42 = vmul.f32 %v1644_v40, %v1644_v40  ;;  %v56_v54 = vmul.f32 %v1644_v40, %v1642_v30 }
  0x33   :  { %662 = vperm.xlu1 %1640, %v640_v39   ;;  %978 = vperm.xlu0 %1639, %v952_v41  }
  0x34   :  { %v52_v44 = vmax.f32 %v51_v42, 1e-30 }
  0x36   :  { %1645 = vrsqrt.f32 %v52_v44 }
  0x37   :  { %970 = vperm.xlu1 %1640, %v967_v43   ;;  %1122 = vperm.xlu0 %1639, %v1084_v45  }
  0x3b   :  { %1117 = vperm.xlu1 %1640, %v1083_v46   ;;  %1112 = vperm.xlu0 %1639, %v1082_v47  }
  0x3f   :  { %1107 = vperm.xlu1 %1640, %v1081_v48   ;;  %1102 = vperm.xlu0 %1639, %v1080_v49  }
  0x43   :  { %v1646_v52 = vpop.eup %1645  ;;  %1097 = vperm.xlu1 %1640, %v1079_v50   ;;  %1092 = vperm.xlu0 %1639, %v1078_v51  }
  0x44   :  { %v54_v53 = vmul.f32 0.996, %v1646_v52 }
  0x46   :  { %v55_v57 = vmin.f32 %v54_v53, 1.0 }
  0x47   :  { %1087 = vperm.xlu1 %1640, %v1077_v55   ;;  %1311 = vperm.xlu0 %1639, %v1286_v56  }
  0x48   :  { %v57_v59 = vmul.f32 %v56_v54, %v55_v57  ;;  %v60_v60 = vmul.f32 %v55_v57, %v51_v42 }
  0x4a   :  { %v59_v62 = vmul.f32 %v57_v59, %v1792_v1  ;;  %v61_v63 = vmul.f32 %v60_v60, %v55_v57  ;;  %v58_v3 = vmul.f32 %v57_v59, %v1787_v0  ;;  %v76_v0 = vld [vmem:[%s2356_s1 + $0x8] sm:$0xff]  ;;  %v77_v1 = vld [vmem:[%s2356_s1 + $0x10] sm:$0xff] }
  0x4b   :  { %1303 = vperm.xlu1 %1640, %v1300_v58   ;;  %1369 = vperm.xlu0 %1639, %v1366_v61  }
  0x4c   :  { %1480 = vmatpush3.msra.mxu0 %v59_v62  ;;  %v62_v7 = vmax.f32 %v61_v63, 1e-30 }
  0x4d   :  { %1481 = vmatprep.subr.mxu0 %v1725_v2 }
  0x4e   :  { %1482 = vmatpush3.msra.mxu0 %v58_v3  ;;  %1647 = vrsqrt.f32 %v62_v7 }
  0x4f   :  { %1484 = vmatmul.mubr.msk.f32.vlgmr.msra.gmra.mxu0 %vm80_vm1, %v75_v4  ;;  %1557 = vmatprep.subr.mxu0 %v1725_v2 }
  0x50   :  { %1486 = vmatprep.mubr.msk.f32.mxu0 %vm1726_vm0, %v1725_v2 }
  0x53   :  { %1487 = vmatmul.mubr.msk.f32.gmra.mxu0 %vm80_vm1, %v76_v0 }
  0x54   :  { %1489 = vmatprep.mubr.msk.f32.mxu0 %vm1726_vm0, %v1725_v2 }
  0x57   :  { %1490 = vmatmul.mubr.msk.f32.gmra.mxu0 %vm80_vm1, %v77_v1 }
  0x58   :  { %1492 = vmatprep.mubr.msk.f32.mxu0 %vm1726_vm0, %v1725_v2 }
  0x5b   :  { %1493 = vmatmul.mubr.msk.f32.gmra.mxu0 %vm80_vm1, %v78_v5  ;;  %v1648_v8 = vpop.eup %1647 }
  0x5c   :  { %1495 = vmatprep.mubr.msk.f32.mxu0 %vm1726_vm0, %v1725_v2  ;;  %v64_v9 = vmul.f32 %v1648_v8, %v62_v7 }
  0x5e   :  { %v1390_v10 = vclamps-f32 %v64_v9, 0.9999999 }
  0x5f   :  { %1496 = vmatmul.mubr.msk.f32.gmra.mxu0 %vm80_vm1, %v79_v6 }
  0x60   :  { %1589 = vmatprep.mubr.msk.f32.mxu0 %vm1726_vm0, %v1725_v2  ;;  %v68_v11 = vsub.f32 1.0, %v1390_v10  ;;  %v67_v21 = vadd.f32 1.0, %v1390_v10  ;;  %v249_v10 = vlaneseq }
  0x62   :  { %1649 = vrcp.f32 %v68_v11  ;;  %v1953_v11 = vshrl.u32 %v249_v10, 7 }
  0x64   :  { %vm1337_vm6 = vcmp.lt.s32.totalorder %v1953_v11, 1 }
  0x6f   :  { %v1650_v23 = vpop.eup %1649 }
  0x70   :  { %v70_v28 = vmul.f32 %v1650_v23, %v67_v21 }
  0x72   :  { %1651 = vlog2.f32 %v70_v28 }
  0x7e   :  { %v222_v48 = vpop.permute.xlu0 %221 }
  0x7f   :  { %v1652_v39 = vpop.eup %1651 }
  0x80   :  { %v72_v40 = vmul.f32 0.6931472, %v1652_v39 }
  0x82   :  { %v73_v41 = vmul.f32 0.5, %v72_v40  ;;  %v214_v54 = vpop.permute.xlu0 %213 }
  0x84   :  { %v74_v42 = vmul.f32 %v1648_v8, %v73_v41 }
 0x10f   :  { %v1937_v12 = vpop.f32.mrf.mxu0 }
 0x110   :  { %v186_v18 = vmul.f32 %v1937_v12, %v1937_v12 }
 0x111   :  { %v1485_v13 = vpop.f32.mrf.mxu0 }
 0x113   :  { %v1939_v14 = vpop.f32.mrf.mxu0 }
 0x114   :  { %v187_v16 = vmul.f32 %v1939_v14, %v1939_v14 }
 0x115   :  { %v1488_v15 = vpop.f32.mrf.mxu0 }
 0x116   :  { %v190_v22 = vadd.f32 %v187_v16, %v186_v18  ;;  %v1956_v18 = vsub.s32 0, %v1953_v11 }
 0x117   :  { %v1943_v17 = vpop.f32.mrf.mxu0 }
 0x118   :  { %v188_v19 = vmul.f32 %v1943_v17, %v1943_v17 }
 0x119   :  { %v1491_v20 = vpop.f32.mrf.mxu0 }
 0x11a   :  { %v191_v25 = vadd.f32 %v190_v22, %v188_v19  ;;  %v283_v19 = vpop.permute.xlu1 %282 }
 0x11b   :  { %v1949_v24 = vpop.f32.mrf.mxu0 }
 0x11c   :  { %v189_v26 = vmul.f32 %v1949_v24, %v1949_v24 }
 0x11d   :  { %v1494_v27 = vpop.f32.mrf.mxu0 }
 0x11e   :  { %v192_v29 = vadd.f32 %v191_v25, %v189_v26  ;;  %v278_v23 = vpop.permute.xlu1 %277 }
 0x11f   :  { %v182_v30 = vpop.f32.mrf.mxu0 }
 0x120   :  { %v193_v31 = vrot.slane %v192_v29, 4 }
 0x121   :  { %v1497_v32 = vpop.f32.mrf.mxu0 }
 0x122   :  { %v194_v33 = vadd.f32 %v193_v31, %v192_v29  ;;  %v273_v31 = vpop.permute.xlu0 %272 }
 0x124   :  { %v195_v34 = vrot.slane %v194_v33, 2 }
 0x126   :  { %v196_v35 = vadd.f32 %v195_v34, %v194_v33 }
 0x128   :  { %v197_v36 = vrot.slane %v196_v35, 1 }
 0x12a   :  { %v198_v37 = vadd.f32 %v197_v36, %v196_v35 }
 0x12c   :  { %v200_v38 = vmax.f32 %v198_v37, 1e-30  ;;  %v268_v37 = vpop.permute.xlu1 %267 }
 0x12e   :  { %1653 = vrsqrt.f32 %v200_v38 }
 0x13b   :  { %v1654_v43 = vpop.eup %1653 }
 0x13c   :  { %v202_v44 = vmul.f32 %v1654_v43, %v200_v38 }
 0x13e   :  { %v203_v45 = vmul.f32 %v202_v44, %v74_v42 }
 0x140   :  { %1655 = vtanh.f32 %v203_v45  ;;  %v315_v45 = vld [vmem:[%s2358_s3 + $0x8] sm:$0xff] }
 0x14d   :  { %v1656_v46 = vpop.eup %1655 }
 0x14e   :  { %v205_v47 = vmul.f32 %v1656_v46, %v1654_v43  ;;  %v206_v49 = vmul.f32 %v1656_v46, %v1656_v46  ;;  %v316_v46 = vld [vmem:[%s2358_s3 + $0x10] sm:$0xff] }
 0x150   :  { %v207_v50 = vmul.f32 %v205_v47, %v182_v30  ;;  %v224_v53 = vmul.f32 %v222_v48, %v206_v49  ;;  %v217_v56 = vmul.f32 -1.0, %v206_v49 }
 0x152   :  { %v208_v51 = vmul.f32 -2.0, %v207_v50  ;;  %v218_v60 = vadd.f32 1.0, %v217_v56  ;;  %v326_v56 = vld [vmem:[%s2358_s3 + $0x60] sm:$0xff] }
 0x154   :  { %v209_v52 = vsub.f32 1.0, %v208_v51  ;;  %v238_v4 = vmul.f32 %v218_v60, %v218_v60  ;;  %v321_v51 = vld [vmem:[%s2358_s3 + $0x38] sm:$0xff] }
 0x156   :  { %v216_v55 = vsub.f32 %v209_v52, %v214_v54  ;;  %v225_v57 = vadd.f32 %v224_v53, %v209_v52  ;;  %v239_v1 = vmul.f32 %v238_v4, %v222_v48  ;;  %v318_v48 = vld [vmem:[%s2358_s3 + $0x20] sm:$0xff]  ;;  %v323_v53 = vld [vmem:[%s2358_s3 + $0x48] sm:$0xff]  ;;  %v324_v54 = vld [vmem:[%s2358_s3 + $0x50] sm:$0xff] }
 0x157   :  { %v322_v52 = vld [vmem:[%s2358_s3 + $0x40] sm:$0xff] }
 0x158   :  { %v226_v58 = vmax.f32 %v225_v57, 1e-15  ;;  %v234_v59 = vmul.f32 2.0, %v216_v55  ;;  %v232_v62 = vmul.f32 %v216_v55, %v216_v55  ;;  %v229_v13 = vmul.f32 %v216_v55, %v205_v47  ;;  %v317_v47 = vld [vmem:[%s2358_s3 + $0x18] sm:$0xff]  ;;  %v327_v57 = vld [vmem:[%s2358_s3 + $0x68] sm:$0xff] }
 0x159   :  { %v325_v55 = vld [vmem:[%s2358_s3 + $0x58] sm:$0xff] }
 0x15a   :  { %1657 = vrcp.f32 %v226_v58  ;;  %v235_v61 = vmul.f32 %v234_v59, %v218_v60  ;;  %v233_v3 = vmul.f32 %v232_v62, %v206_v49  ;;  %v319_v49 = vld [vmem:[%s2358_s3 + $0x28] sm:$0xff]  ;;  %v328_v58 = vld [vmem:[%s2358_s3 + $0x70] sm:$0xff]  ;;  %v329_v59 = vld [vmem:[%s2358_s3 + $0x78] sm:$0xff] }
 0x15c   :  { %v236_v63 = vmul.f32 %v235_v61, %v207_v50  ;;  %v320_v50 = vld [vmem:[%s2358_s3 + $0x30] sm:$0xff] }
 0x15e   :  { %v237_v0 = vadd.f32 %v236_v63, %v233_v3 }
 0x160   :  { %v240_v6 = vadd.f32 %v239_v1, %v237_v0 }
 0x167   :  { %v1658_v5 = vpop.eup %1657 }
 0x168   :  { %v241_v7 = vmul.f32 %v1658_v5, %v1658_v5  ;;  %v230_v15 = vmul.f32 %v1658_v5, %v229_v13  ;;  %v231_v16 = vmul.f32 %v1658_v5, %v218_v60  ;;  %v330_v60 = vld [vmem:[%s2358_s3 + $0x80] sm:$0x1] }
 0x16a   :  { %v242_v8 = vmul.f32 %v241_v7, %v240_v6  ;;  %v252_v20 = vrot.slane %v230_v15, %v1956_v18  ;;  %v264_v21 = vrot.slane %v231_v16, %v1956_v18 }
 0x16c   :  { %v243_v9 = vmax.f32 %v242_v8, 1e-30  ;;  %v256_v26 = vmul.f32 %v252_v20, %v1949_v24  ;;  %v288_v27 = vmul.f32 %v283_v19, %v264_v21  ;;  %v255_v29 = vmul.f32 %v252_v20, %v1943_v17 }
 0x16d   :  { %v287_v30 = vmul.f32 %v278_v23, %v264_v21  ;;  %v254_v32 = vmul.f32 %v252_v20, %v1939_v14  ;;  %v286_v36 = vmul.f32 %v273_v31, %v264_v21  ;;  %v253_v38 = vmul.f32 %v252_v20, %v1937_v12  ;;  %v314_v12 = vld [vmem:[%s2358_s3] sm:$0xff] }
 0x16e   :  { %1659 = vrsqrt.f32 %v243_v9  ;;  %v292_v34 = vadd.f32 %v288_v27, %v256_v26  ;;  %v285_v41 = vmul.f32 %v268_v37, %v264_v21 }
 0x16f   :  { %v291_v24 = vadd.f32 %v287_v30, %v255_v29  ;;  %v290_v17 = vadd.f32 %v286_v36, %v254_v32 }
 0x170   :  { %v289_v43 = vadd.f32 %v285_v41, %v253_v38 }
 0x17b   :  { %v1660_v22 = vpop.eup %1659 }
 0x17c   :  { %v245_v25 = vmul.f32 0.996, %v1660_v22 }
 0x17e   :  { %v246_v28 = vmin.f32 %v245_v25, 1.0 }
 0x180   :  { %v247_v33 = vmul.f32 %v246_v28, %v242_v8  ;;  %v296_v35 = vrot.slane %v246_v28, %v1956_v18 }
 0x182   :  { %v1965_v39 = vmul.f32 %v247_v33, %v246_v28  ;;  %v300_v40 = vmul.f32 %v296_v35, %v292_v34  ;;  %v299_v42 = vmul.f32 %v296_v35, %v291_v24  ;;  %v298_v14 = vmul.f32 %v296_v35, %v290_v17 }
 0x183   :  { %v297_v44 = vmul.f32 %v296_v35, %v289_v43 }
 0x184   :  { %1499 = vmatpush3.msra.mxu1 %v300_v40  ;;  %v301_v7 = vmax.f32 %v1965_v39, 1e-30 }
 0x185   :  { %1500 = vmatprep.subr.mxu1 %v1725_v2 }
 0x186   :  { %1501 = vmatpush3.msra.mxu1 %v299_v42  ;;  %1661 = vrsqrt.f32 %v301_v7 }
 0x187   :  { %1502 = vmatprep.subr.mxu1 %v1725_v2 }
 0x188   :  { %1503 = vmatpush3.msra.mxu1 %v298_v14 }
 0x189   :  { %1504 = vmatprep.subr.mxu1 %v1725_v2 }
 0x18a   :  { %1505 = vmatpush3.msra.mxu1 %v297_v44 }
 0x18b   :  { %1507 = vmatmul.mubr.msk.f32.vlgmr.msra.gmra.mxu1 %vm331_vm2, %v314_v12 }
 0x18c   :  { %1509 = vmatprep.mubr.msk.f32.mxu1 %vm1726_vm0, %v1725_v2 }
 0x18f   :  { %1510 = vmatmul.mubr.msk.f32.gmra.mxu1 %vm331_vm2, %v315_v45 }
 0x190   :  { %1512 = vmatprep.mubr.msk.f32.mxu1 %vm1726_vm0, %v1725_v2 }
 0x193   :  { %1513 = vmatmul.mubr.msk.f32.gmra.mxu1 %vm331_vm2, %v316_v46  ;;  %v2095_v25 = vpop.eup %1661 }
 0x194   :  { %1515 = vmatprep.mubr.msk.f32.mxu1 %vm1726_vm0, %v1725_v2  ;;  %v303_v30 = vmul.f32 %v2095_v25, %v301_v7 }
 0x196   :  { %v1396_v37 = vclamps-f32 %v303_v30, 0.9999999 }
 0x197   :  { %1516 = vmatmul.mubr.msk.f32.gmra.mxu1 %vm331_vm2, %v317_v47 }
 0x198   :  { %1518 = vmatprep.mubr.msk.f32.mxu1 %vm1726_vm0, %v1725_v2  ;;  %v307_v17 = vsub.f32 1.0, %v1396_v37 }
 0x19a   :  { %1663 = vrcp.f32 %v307_v17 }
 0x19b   :  { %1519 = vmatmul.mubr.msk.f32.gmra.mxu1 %vm331_vm2, %v318_v48 }
 0x19c   :  { %1521 = vmatprep.mubr.msk.f32.mxu1 %vm1726_vm0, %v1725_v2 }
 0x19f   :  { %1522 = vmatmul.mubr.msk.f32.gmra.mxu1 %vm331_vm2, %v319_v49 }
 0x1a0   :  { %1524 = vmatprep.mubr.msk.f32.mxu1 %vm1726_vm0, %v1725_v2 }
 0x1a3   :  { %1525 = vmatmul.mubr.msk.f32.gmra.mxu1 %vm331_vm2, %v320_v50 }
 0x1a4   :  { %1527 = vmatprep.mubr.msk.f32.mxu1 %vm1726_vm0, %v1725_v2 }
 0x1a7   :  { %1528 = vmatmul.mubr.msk.f32.gmra.mxu1 %vm331_vm2, %v321_v51 }
 0x1a8   :  { %1530 = vmatprep.mubr.msk.f32.mxu1 %vm1726_vm0, %v1725_v2 }
 0x1ab   :  { %1531 = vmatmul.mubr.msk.f32.gmra.mxu1 %vm331_vm2, %v322_v52 }
 0x1ac   :  { %1533 = vmatprep.mubr.msk.f32.mxu1 %vm1726_vm0, %v1725_v2 }
 0x1af   :  { %1534 = vmatmul.mubr.msk.f32.gmra.mxu1 %vm331_vm2, %v323_v53 }
 0x1b0   :  { %1536 = vmatprep.mubr.msk.f32.mxu1 %vm1726_vm0, %v1725_v2 }
 0x1b3   :  { %1537 = vmatmul.mubr.msk.f32.gmra.mxu1 %vm331_vm2, %v324_v54 }
 0x1b4   :  { %1539 = vmatprep.mubr.msk.f32.mxu1 %vm1726_vm0, %v1725_v2 }
 0x1b7   :  { %1540 = vmatmul.mubr.msk.f32.gmra.mxu1 %vm331_vm2, %v325_v55 }
 0x1b8   :  { %1542 = vmatprep.mubr.msk.f32.mxu1 %vm1726_vm0, %v1725_v2 }
 0x1bb   :  { %1543 = vmatmul.mubr.msk.f32.gmra.mxu1 %vm331_vm2, %v326_v56 }
 0x1bc   :  { %1545 = vmatprep.mubr.msk.f32.mxu1 %vm1726_vm0, %v1725_v2 }
 0x1bf   :  { %1546 = vmatmul.mubr.msk.f32.gmra.mxu1 %vm331_vm2, %v327_v57 }
 0x1c0   :  { %1548 = vmatprep.mubr.msk.f32.mxu1 %vm1726_vm0, %v1725_v2 }
 0x1c3   :  { %1549 = vmatmul.mubr.msk.f32.gmra.mxu1 %vm331_vm2, %v328_v58 }
 0x1c4   :  { %1551 = vmatprep.mubr.msk.f32.mxu1 %vm1726_vm0, %v1725_v2 }
 0x1c7   :  { %1552 = vmatmul.mubr.msk.f32.gmra.mxu1 %vm331_vm2, %v329_v59 }
 0x1c8   :  { %1554 = vmatprep.mubr.msk.f32.mxu1 %vm1726_vm0, %v1725_v2 }
 0x1cb   :  { %1555 = vmatmul.mubr.msk.f32.gmra.mxu1 %vm331_vm2, %v330_v60 }
 0x24b   :  { %v2070_v61 = vpop.f32.mrf.mxu1 }
 0x24c   :  { %v533_v22 = vmul.f32 %v2070_v61, %v2070_v61 }
 0x24d   :  { %v1508_v62 = vpop.f32.mrf.mxu1 }
 0x24f   :  { %v2072_v63 = vpop.f32.mrf.mxu1 }
 0x250   :  { %v534_v20 = vmul.f32 %v2072_v63, %v2072_v63 }
 0x251   :  { %v1511_v3 = vpop.f32.mrf.mxu1 }
 0x252   :  { %v549_v27 = vadd.f32 %v534_v20, %v533_v22 }
 0x253   :  { %v2074_v4 = vpop.f32.mrf.mxu1 }
 0x254   :  { %v535_v23 = vmul.f32 %v2074_v4, %v2074_v4 }
 0x255   :  { %v1514_v0 = vpop.f32.mrf.mxu1 }
 0x256   :  { %v550_v31 = vadd.f32 %v549_v27, %v535_v23 }
 0x257   :  { %v2076_v1 = vpop.f32.mrf.mxu1 }
 0x258   :  { %v536_v28 = vmul.f32 %v2076_v1, %v2076_v1 }
 0x259   :  { %v1517_v5 = vpop.f32.mrf.mxu1 }
 0x25a   :  { %v551_v34 = vadd.f32 %v550_v31, %v536_v28 }
 0x25b   :  { %v2078_v6 = vpop.f32.mrf.mxu1 }
 0x25c   :  { %v537_v32 = vmul.f32 %v2078_v6, %v2078_v6 }
 0x25d   :  { %v1520_v8 = vpop.f32.mrf.mxu1 }
 0x25e   :  { %v552_v38 = vadd.f32 %v551_v34, %v537_v32  ;;  %v1664_v8 = vpop.eup %1663 }
 0x25f   :  { %v2081_v9 = vpop.f32.mrf.mxu1 }
 0x260   :  { %v538_v35 = vmul.f32 %v2081_v9, %v2081_v9 }
 0x261   :  { %v1523_v10 = vpop.f32.mrf.mxu1 }
 0x262   :  { %v553_v24 = vadd.f32 %v552_v38, %v538_v35 }
 0x263   :  { %v2083_v13 = vpop.f32.mrf.mxu1 }
 0x264   :  { %v539_v39 = vmul.f32 %v2083_v13, %v2083_v13 }
 0x265   :  { %v1526_v15 = vpop.f32.mrf.mxu1 }
 0x266   :  { %v554_v14 = vadd.f32 %v553_v24, %v539_v39  ;;  %v306_v15 = vadd.f32 1.0, %v1396_v37 }
 0x267   :  { %v2085_v16 = vpop.f32.mrf.mxu1 }
 0x268   :  { %v540_v41 = vmul.f32 %v2085_v16, %v2085_v16  ;;  %v309_v22 = vmul.f32 %v1664_v8, %v306_v15 }
 0x269   :  { %v1529_v19 = vpop.f32.mrf.mxu1 }
 0x26a   :  { %v555_v12 = vadd.f32 %v554_v14, %v540_v41  ;;  %1665 = vlog2.f32 %v309_v22 }
 0x26b   :  { %v2089_v21 = vpop.f32.mrf.mxu1 }
 0x26c   :  { %v541_v43 = vmul.f32 %v2089_v21, %v2089_v21 }
 0x26d   :  { %v1532_v26 = vpop.f32.mrf.mxu1 }
 0x26e   :  { %v556_v47 = vadd.f32 %v555_v12, %v541_v43  ;;  %v593_v12 = vpop.permute.xlu0 %592 }
 0x26f   :  { %v2099_v29 = vpop.f32.mrf.mxu1 }
 0x270   :  { %v542_v45 = vmul.f32 %v2099_v29, %v2099_v29 }
 0x271   :  { %v1535_v33 = vpop.f32.mrf.mxu1 }
 0x272   :  { %v557_v50 = vadd.f32 %v556_v47, %v542_v45 }
 0x273   :  { %v2106_v36 = vpop.f32.mrf.mxu1 }
 0x274   :  { %v543_v48 = vmul.f32 %v2106_v36, %v2106_v36 }
 0x275   :  { %v1538_v40 = vpop.f32.mrf.mxu1 }
 0x276   :  { %v558_v53 = vadd.f32 %v557_v50, %v543_v48  ;;  %v585_v48 = vpop.permute.xlu1 %584 }
 0x277   :  { %v2112_v42 = vpop.f32.mrf.mxu1  ;;  %v1666_v34 = vpop.eup %1665 }
 0x278   :  { %v544_v51 = vmul.f32 %v2112_v42, %v2112_v42  ;;  %v311_v35 = vmul.f32 0.6931472, %v1666_v34 }
 0x279   :  { %v1541_v44 = vpop.f32.mrf.mxu1 }
 0x27a   :  { %v559_v56 = vadd.f32 %v558_v53, %v544_v51  ;;  %v312_v38 = vmul.f32 0.5, %v311_v35 }
 0x27b   :  { %v2118_v46 = vpop.f32.mrf.mxu1 }
 0x27c   :  { %v545_v54 = vmul.f32 %v2118_v46, %v2118_v46  ;;  %v313_v40 = vmul.f32 %v2095_v25, %v312_v38 }
 0x27d   :  { %v1544_v49 = vpop.f32.mrf.mxu1 }
 0x27e   :  { %v560_v59 = vadd.f32 %v559_v56, %v545_v54 }
 0x27f   :  { %v2124_v52 = vpop.f32.mrf.mxu1 }
 0x280   :  { %v546_v57 = vmul.f32 %v2124_v52, %v2124_v52 }
 0x281   :  { %v1547_v55 = vpop.f32.mrf.mxu1 }
 0x282   :  { %v561_v3 = vadd.f32 %v560_v59, %v546_v57 }
 0x283   :  { %v2130_v58 = vpop.f32.mrf.mxu1 }
 0x284   :  { %v547_v60 = vmul.f32 %v2130_v58, %v2130_v58 }
 0x285   :  { %v1550_v62 = vpop.f32.mrf.mxu1 }
 0x286   :  { %v562_v5 = vadd.f32 %v561_v3, %v547_v60 }
 0x287   :  { %v2134_v0 = vpop.f32.mrf.mxu1 }
 0x288   :  { %v548_v7 = vmul.f32 %v2134_v0, %v2134_v0 }
 0x289   :  { %v1553_v10 = vpop.f32.mrf.mxu1 }
 0x28a   :  { %v563_v19 = vadd.f32 %v562_v5, %v548_v7 }
 0x28b   :  { %v529_v20 = vpop.f32.mrf.mxu1 }
 0x28c   :  { %v564_v23 = vrot.slane %v563_v19, 4 }
 0x28d   :  { %v1556_v26 = vpop.f32.mrf.mxu1 }
 0x28e   :  { %v565_v27 = vadd.f32 %v564_v23, %v563_v19  ;;  %v738_v19 = vpop.permute.xlu0 %737 }
 0x290   :  { %v566_v28 = vrot.slane %v565_v27, 2 }
 0x292   :  { %v567_v30 = vadd.f32 %v566_v28, %v565_v27  ;;  %v728_v23 = vpop.permute.xlu0 %727 }
 0x294   :  { %v568_v31 = vrot.slane %v567_v30, 1 }
 0x296   :  { %v569_v32 = vadd.f32 %v568_v31, %v567_v30 }
 0x298   :  { %v571_v33 = vmax.f32 %v569_v32, 1e-30  ;;  %v718_v32 = vpop.permute.xlu0 %717 }
 0x29a   :  { %1667 = vrsqrt.f32 %v571_v33 }
 0x2a7   :  { %v1668_v39 = vpop.eup %1667 }
 0x2a8   :  { %v573_v37 = vmul.f32 %v1668_v39, %v571_v33 }
 0x2aa   :  { %v574_v24 = vmul.f32 %v573_v37, %v313_v40 }
 0x2ac   :  { %1669 = vtanh.f32 %v574_v24 }
 0x2b9   :  { %v1670_v41 = vpop.eup %1669 }
 0x2ba   :  { %v576_v17 = vmul.f32 %v1670_v41, %v1668_v39  ;;  %v577_v14 = vmul.f32 %v1670_v41, %v1670_v41  ;;  %v708_v41 = vpop.permute.xlu0 %707 }
 0x2bc   :  { %v578_v43 = vmul.f32 %v576_v17, %v529_v20  ;;  %v595_v47 = vmul.f32 %v593_v12, %v577_v14  ;;  %v588_v50 = vmul.f32 -1.0, %v577_v14  ;;  %v733_v20 = vpop.permute.xlu1 %732 }
 0x2be   :  { %v579_v44 = vmul.f32 -2.0, %v578_v43  ;;  %v589_v55 = vadd.f32 1.0, %v588_v50 }
 0x2c0   :  { %v580_v45 = vsub.f32 1.0, %v579_v44  ;;  %v609_v60 = vmul.f32 %v589_v55, %v589_v55  ;;  %v723_v28 = vpop.permute.xlu1 %722 }
 0x2c2   :  { %v587_v49 = vsub.f32 %v580_v45, %v585_v48  ;;  %v596_v51 = vadd.f32 %v595_v47, %v580_v45  ;;  %v610_v3 = vmul.f32 %v609_v60, %v593_v12 }
 0x2c4   :  { %v597_v53 = vmax.f32 %v596_v51, 1e-15  ;;  %v605_v54 = vmul.f32 2.0, %v587_v49  ;;  %v603_v56 = vmul.f32 %v587_v49, %v587_v49  ;;  %v600_v22 = vmul.f32 %v587_v49, %v576_v17  ;;  %v713_v34 = vpop.permute.xlu1 %712 }
 0x2c6   :  { %1671 = vrcp.f32 %v597_v53  ;;  %v606_v25 = vmul.f32 %v605_v54, %v589_v55  ;;  %v604_v59 = vmul.f32 %v603_v56, %v577_v14  ;;  %v698_v54 = vpop.permute.xlu0 %697 }
 0x2c8   :  { %v607_v57 = vmul.f32 %v606_v25, %v578_v43 }
 0x2ca   :  { %v608_v62 = vadd.f32 %v607_v57, %v604_v59 }
 0x2cc   :  { %v611_v7 = vadd.f32 %v610_v3, %v608_v62 }
 0x2d3   :  { %v1672_v5 = vpop.eup %1671 }
 0x2d4   :  { %v612_v8 = vmul.f32 %v1672_v5, %v1672_v5  ;;  %v601_v26 = vmul.f32 %v1672_v5, %v600_v22  ;;  %v602_v27 = vmul.f32 %v1672_v5, %v589_v55 }
 0x2d6   :  { %v613_v10 = vmul.f32 %v612_v8, %v611_v7  ;;  %v2140_v30 = vrot.slane %v601_v26, %v1956_v18  ;;  %v2143_v31 = vrot.slane %v602_v27, %v1956_v18  ;;  %v688_v8 = vpop.permute.xlu0 %687 }
 0x2d8   :  { %v614_v15 = vmax.f32 %v613_v10, 1e-30  ;;  %v639_v38 = vmul.f32 %v2140_v30, %v2134_v0  ;;  %v755_v39 = vmul.f32 %v738_v19, %v2143_v31  ;;  %v638_v37 = vmul.f32 %v2140_v30, %v2130_v58  ;;  %v703_v0 = vpop.permute.xlu1 %702 }
 0x2d9   :  { %v754_v24 = vmul.f32 %v733_v20, %v2143_v31  ;;  %v637_v17 = vmul.f32 %v2140_v30, %v2124_v52  ;;  %v753_v12 = vmul.f32 %v728_v23, %v2143_v31  ;;  %v636_v45 = vmul.f32 %v2140_v30, %v2118_v46 }
 0x2da   :  { %1673 = vrsqrt.f32 %v614_v15  ;;  %v771_v44 = vadd.f32 %v755_v39, %v639_v38  ;;  %v752_v49 = vmul.f32 %v723_v28, %v2143_v31  ;;  %v635_v51 = vmul.f32 %v2140_v30, %v2112_v42 }
 0x2db   :  { %v770_v48 = vadd.f32 %v754_v24, %v638_v37  ;;  %v769_v50 = vadd.f32 %v753_v12, %v637_v17  ;;  %v751_v53 = vmul.f32 %v718_v32, %v2143_v31  ;;  %v634_v25 = vmul.f32 %v2140_v30, %v2106_v36 }
 0x2dc   :  { %v768_v55 = vadd.f32 %v752_v49, %v636_v45  ;;  %v750_v56 = vmul.f32 %v713_v34, %v2143_v31  ;;  %v693_v57 = vpop.permute.xlu1 %692  ;;  %v633_v60 = vmul.f32 %v2140_v30, %v2099_v29  ;;  %v749_v62 = vmul.f32 %v708_v41, %v2143_v31 }
 0x2dd   :  { %v767_v59 = vadd.f32 %v751_v53, %v635_v51  ;;  %v632_v5 = vmul.f32 %v2140_v30, %v2089_v21  ;;  %v748_v7 = vmul.f32 %v703_v0, %v2143_v31  ;;  %v631_v15 = vmul.f32 %v2140_v30, %v2085_v16 }
 0x2de   :  { %v766_v36 = vadd.f32 %v750_v56, %v634_v25  ;;  %v765_v29 = vadd.f32 %v749_v62, %v633_v60  ;;  %v747_v19 = vmul.f32 %v698_v54, %v2143_v31  ;;  %v630_v23 = vmul.f32 %v2140_v30, %v2083_v13  ;;  %v811_v25 = vld [vmem:[%s2360_s5 + $0x30] sm:$0xff]  ;;  %v812_v56 = vld [vmem:[%s2360_s5 + $0x38] sm:$0xff] }
 0x2df   :  { %v764_v22 = vadd.f32 %v748_v7, %v632_v5  ;;  %v746_v26 = vmul.f32 %v693_v57, %v2143_v31  ;;  %v629_v28 = vmul.f32 %v2140_v30, %v2081_v9  ;;  %v745_v32 = vmul.f32 %v688_v8, %v2143_v31  ;;  %v813_v57 = vld [vmem:[%s2360_s5 + $0x40] sm:$0x3] }
 0x2e0   :  { %v683_v20 = vpop.permute.xlu1 %682  ;;  %v763_v16 = vadd.f32 %v747_v19, %v631_v15  ;;  %v627_v37 = vmul.f32 %v2140_v30, %v2076_v1  ;;  %v626_v17 = vmul.f32 %v2140_v30, %v2074_v4  ;;  %v625_v0 = vmul.f32 %v2140_v30, %v2072_v63 }
 0x2e1   :  { %v762_v13 = vadd.f32 %v746_v26, %v630_v23  ;;  %v744_v38 = vmul.f32 %v683_v20, %v2143_v31  ;;  %v624_v49 = vmul.f32 %v2140_v30, %v2070_v61  ;;  %v805_v61 = vld [vmem:[%s2360_s5] sm:$0xff] }
 0x2e4   :  { %v673_v39 = vpop.permute.xlu1 %672 }
 0x2e7   :  { %v1674_v33 = vpop.eup %1673 }
 0x2e8   :  { %v616_v35 = vmul.f32 0.996, %v1674_v33  ;;  %v678_v33 = vpop.permute.xlu0 %677 }
 0x2e9   :  { %v743_v24 = vmul.f32 %v678_v33, %v2143_v31 }
 0x2ea   :  { %v617_v40 = vmin.f32 %v616_v35, 1.0  ;;  %v628_v35 = vmul.f32 %v2140_v30, %v2078_v6  ;;  %v806_v30 = vld [vmem:[%s2360_s5 + $0x8] sm:$0xff] }
 0x2eb   :  { %v759_v1 = vadd.f32 %v743_v24, %v627_v37 }
 0x2ec   :  { %v618_v14 = vmul.f32 %v617_v40, %v613_v10  ;;  %v2154_v43 = vrot.slane %v617_v40, %v1956_v18  ;;  %v760_v6 = vadd.f32 %v744_v38, %v628_v35 }
 0x2ee   :  { %v2159_v47 = vmul.f32 %v618_v14, %v617_v40  ;;  %v791_v58 = vmul.f32 %v2154_v43, %v771_v44  ;;  %v790_v52 = vmul.f32 %v2154_v43, %v770_v48  ;;  %v789_v46 = vmul.f32 %v2154_v43, %v769_v50  ;;  %v668_v44 = vpop.permute.xlu0 %667 }
 0x2ef   :  { %v788_v42 = vmul.f32 %v2154_v43, %v768_v55  ;;  %v787_v3 = vmul.f32 %v2154_v43, %v767_v59  ;;  %v786_v10 = vmul.f32 %v2154_v43, %v766_v36  ;;  %v785_v21 = vmul.f32 %v2154_v43, %v765_v29  ;;  %v810_v55 = vld [vmem:[%s2360_s5 + $0x28] sm:$0xff] }
 0x2f0   :  { %1558 = vmatpush3.msra.mxu0 %v791_v58  ;;  %v784_v27 = vmul.f32 %v2154_v43, %v764_v22  ;;  %v783_v34 = vmul.f32 %v2154_v43, %v763_v16  ;;  %v782_v9 = vmul.f32 %v2154_v43, %v762_v13  ;;  %v761_v40 = vadd.f32 %v745_v32, %v629_v28  ;;  %v663_v58 = vpop.permute.xlu1 %662 }
 0x2f1   :  { %1559 = vmatprep.subr.mxu0 %v1725_v2  ;;  %v742_v14 = vmul.f32 %v673_v39, %v2143_v31  ;;  %v780_v12 = vmul.f32 %v2154_v43, %v760_v6  ;;  %v741_v45 = vmul.f32 %v668_v44, %v2143_v31  ;;  %v779_v4 = vmul.f32 %v2154_v43, %v759_v1 }
 0x2f2   :  { %1560 = vmatpush3.msra.mxu0 %v790_v52  ;;  %v781_v41 = vmul.f32 %v2154_v43, %v761_v40  ;;  %v740_v52 = vmul.f32 %v663_v58, %v2143_v31  ;;  %v807_v31 = vld [vmem:[%s2360_s5 + $0x10] sm:$0xff] }
 0x2f3   :  { %1561 = vmatprep.subr.mxu0 %v1725_v2  ;;  %v758_v48 = vadd.f32 %v742_v14, %v626_v17  ;;  %v757_v63 = vadd.f32 %v741_v45, %v625_v0 }
 0x2f4   :  { %1562 = vmatpush3.msra.mxu0 %v789_v46  ;;  %v756_v53 = vadd.f32 %v740_v52, %v624_v49  ;;  %v809_v46 = vld [vmem:[%s2360_s5 + $0x20] sm:$0xff] }
 0x2f5   :  { %1563 = vmatprep.subr.mxu0 %v1725_v2  ;;  %v778_v50 = vmul.f32 %v2154_v43, %v758_v48  ;;  %v777_v51 = vmul.f32 %v2154_v43, %v757_v63 }
 0x2f6   :  { %1564 = vmatpush3.msra.mxu0 %v788_v42  ;;  %v776_v54 = vmul.f32 %v2154_v43, %v756_v53  ;;  %v808_v43 = vld [vmem:[%s2360_s5 + $0x18] sm:$0xff]  ;;  %v792_v42 = vmax.f32 %v2159_v47, 1e-30 }
 0x2f7   :  { %1565 = vmatprep.subr.mxu0 %v1725_v2 }
 0x2f8   :  { %1566 = vmatpush3.msra.mxu0 %v787_v3  ;;  %1675 = vrsqrt.f32 %v792_v42 }
 0x2f9   :  { %1567 = vmatprep.subr.mxu0 %v1725_v2 }
 0x2fa   :  { %1568 = vmatpush3.msra.mxu0 %v786_v10 }
 0x2fb   :  { %1569 = vmatprep.subr.mxu0 %v1725_v2 }
 0x2fc   :  { %1570 = vmatpush3.msra.mxu0 %v785_v21 }
 0x2fd   :  { %1571 = vmatprep.subr.mxu0 %v1725_v2 }
 0x2fe   :  { %1572 = vmatpush3.msra.mxu0 %v784_v27 }
 0x2ff   :  { %1573 = vmatprep.subr.mxu0 %v1725_v2 }
 0x300   :  { %1574 = vmatpush3.msra.mxu0 %v783_v34 }
 0x301   :  { %1575 = vmatprep.subr.mxu0 %v1725_v2 }
 0x302   :  { %1576 = vmatpush3.msra.mxu0 %v782_v9 }
 0x303   :  { %1577 = vmatprep.subr.mxu0 %v1725_v2 }
 0x304   :  { %1578 = vmatpush3.msra.mxu0 %v781_v41 }
 0x305   :  { %1579 = vmatprep.subr.mxu0 %v1725_v2  ;;  %v1676_v59 = vpop.eup %1675 }
 0x306   :  { %1580 = vmatpush3.msra.mxu0 %v780_v12  ;;  %v794_v62 = vmul.f32 %v1676_v59, %v792_v42 }
 0x307   :  { %1581 = vmatprep.subr.mxu0 %v1725_v2 }
 0x308   :  { %1582 = vmatpush3.msra.mxu0 %v779_v4  ;;  %v1414_v5 = vclamps-f32 %v794_v62, 0.9999999 }
 0x309   :  { %1583 = vmatprep.subr.mxu0 %v1725_v2 }
 0x30a   :  { %1584 = vmatpush3.msra.mxu0 %v778_v50  ;;  %v798_v10 = vsub.f32 1.0, %v1414_v5  ;;  %v797_v41 = vadd.f32 1.0, %v1414_v5 }
 0x30b   :  { %1585 = vmatprep.subr.mxu0 %v1725_v2 }
 0x30c   :  { %1586 = vmatpush3.msra.mxu0 %v777_v51  ;;  %1677 = vrcp.f32 %v798_v10 }
 0x30d   :  { %1587 = vmatprep.subr.mxu0 %v1725_v2 }
 0x30e   :  { %1588 = vmatpush3.msra.mxu0 %v776_v54 }
 0x30f   :  { %1590 = vmatmul.mubr.f32.vlgmr.msra.gmra.mxu0 %v805_v61  ;;  %1616 = vmatprep.subr.mxu0 %v1725_v2 }
 0x310   :  { %1592 = vmatprep.mubr.msk.f32.mxu0 %vm1726_vm0, %v1725_v2 }
 0x313   :  { %1593 = vmatmul.mubr.f32.gmra.mxu0 %v806_v30 }
 0x314   :  { %1595 = vmatprep.mubr.msk.f32.mxu0 %vm1726_vm0, %v1725_v2 }
 0x317   :  { %1596 = vmatmul.mubr.f32.gmra.mxu0 %v807_v31 }
 0x318   :  { %1598 = vmatprep.mubr.msk.f32.mxu0 %vm1726_vm0, %v1725_v2 }
 0x319   :  { %v1678_v40 = vpop.eup %1677 }
 0x31a   :  { %v800_v44 = vmul.f32 %v1678_v40, %v797_v41 }
 0x31b   :  { %1599 = vmatmul.mubr.f32.gmra.mxu0 %v808_v43 }
 0x31c   :  { %1601 = vmatprep.mubr.msk.f32.mxu0 %vm1726_vm0, %v1725_v2  ;;  %1679 = vlog2.f32 %v800_v44 }
 0x31f   :  { %1602 = vmatmul.mubr.f32.gmra.mxu0 %v809_v46 }
 0x320   :  { %1604 = vmatprep.mubr.msk.f32.mxu0 %vm1726_vm0, %v1725_v2 }
 0x323   :  { %1605 = vmatmul.mubr.f32.gmra.mxu0 %v810_v55 }
 0x324   :  { %1607 = vmatprep.mubr.msk.f32.mxu0 %vm1726_vm0, %v1725_v2 }
 0x327   :  { %1608 = vmatmul.mubr.f32.gmra.mxu0 %v811_v25 }
 0x328   :  { %1610 = vmatprep.mubr.msk.f32.mxu0 %vm1726_vm0, %v1725_v2 }
 0x329   :  { %v1680_v31 = vpop.eup %1679 }
 0x32a   :  { %v802_v43 = vmul.f32 0.6931472, %v1680_v31 }
 0x32b   :  { %1611 = vmatmul.mubr.f32.gmra.mxu0 %v812_v56 }
 0x32c   :  { %1613 = vmatprep.mubr.msk.f32.mxu0 %vm1726_vm0, %v1725_v2  ;;  %v803_v46 = vmul.f32 0.5, %v802_v43 }
 0x32e   :  { %v804_v55 = vmul.f32 %v1676_v59, %v803_v46 }
 0x32f   :  { %1614 = vmatmul.mubr.f32.gmra.mxu0 %v813_v57 }
 0x330   :  { %1632 = vmatprep.mubr.msk.f32.mxu0 %vm1726_vm0, %v1725_v2  ;;  %v959_v57 = vrot.slane %v804_v55, %v1956_v18 }
 0x3cf   :  { %v2276_v60 = vpop.f32.mrf.mxu0 }
 0x3d0   :  { %v924_v47 = vmul.f32 %v2276_v60, %v2276_v60 }
 0x3d1   :  { %v1591_v3 = vpop.f32.mrf.mxu0 }
 0x3d3   :  { %v2278_v36 = vpop.f32.mrf.mxu0 }
 0x3d4   :  { %v925_v15 = vmul.f32 %v2278_v36, %v2278_v36 }
 0x3d5   :  { %v1594_v7 = vpop.f32.mrf.mxu0 }
 0x3d6   :  { %v928_v22 = vadd.f32 %v925_v15, %v924_v47 }
 0x3d7   :  { %v2280_v8 = vpop.f32.mrf.mxu0 }
 0x3d8   :  { %v926_v20 = vmul.f32 %v2280_v8, %v2280_v8 }
 0x3d9   :  { %v1597_v29 = vpop.f32.mrf.mxu0 }
 0x3da   :  { %v929_v27 = vadd.f32 %v928_v22, %v926_v20  ;;  %v979_v29 = vpop.permute.xlu0 %978  ;;  %v971_v20 = vpop.permute.xlu1 %970 }
 0x3db   :  { %v2284_v19 = vpop.f32.mrf.mxu0 }
 0x3dc   :  { %v927_v23 = vmul.f32 %v2284_v19, %v2284_v19 }
 0x3dd   :  { %v1600_v21 = vpop.f32.mrf.mxu0 }
 0x3de   :  { %v930_v28 = vadd.f32 %v929_v27, %v927_v23  ;;  %v1123_v41 = vpop.permute.xlu0 %1122 }
 0x3df   :  { %v2292_v26 = vpop.f32.mrf.mxu0 }
 0x3e0   :  { %v931_v34 = vrot.slane %v930_v28, 4  ;;  %v937_v38 = vmul.f32 %v2292_v26, %v2292_v26 }
 0x3e1   :  { %v1603_v16 = vpop.f32.mrf.mxu0 }
 0x3e2   :  { %v932_v37 = vadd.f32 %v931_v34, %v930_v28 }
 0x3e3   :  { %v2294_v32 = vpop.f32.mrf.mxu0 }
 0x3e4   :  { %v938_v13 = vmul.f32 %v2294_v32, %v2294_v32  ;;  %v933_v1 = vrot.slane %v932_v37, 2 }
 0x3e5   :  { %v1606_v33 = vpop.f32.mrf.mxu0 }
 0x3e6   :  { %v941_v24 = vadd.f32 %v938_v13, %v937_v38  ;;  %v934_v48 = vadd.f32 %v933_v1, %v932_v37  ;;  %v1113_v1 = vpop.permute.xlu0 %1112 }
 0x3e7   :  { %v2298_v35 = vpop.f32.mrf.mxu0 }
 0x3e8   :  { %v939_v39 = vmul.f32 %v2298_v35, %v2298_v35  ;;  %v935_v50 = vrot.slane %v934_v48, 1 }
 0x3e9   :  { %v1609_v9 = vpop.f32.mrf.mxu0 }
 0x3ea   :  { %v942_v17 = vadd.f32 %v941_v24, %v939_v39  ;;  %v936_v53 = vadd.f32 %v935_v50, %v934_v48 }
 0x3eb   :  { %v2304_v6 = vpop.f32.mrf.mxu0 }
 0x3ec   :  { %v940_v14 = vmul.f32 %v2304_v6, %v2304_v6 }
 0x3ed   :  { %v1612_v12 = vpop.f32.mrf.mxu0 }
 0x3ee   :  { %v943_v0 = vadd.f32 %v942_v17, %v940_v14  ;;  %v1118_v17 = vpop.permute.xlu1 %1117 }
 0x3ef   :  { %v920_v45 = vpop.f32.mrf.mxu0 }
 0x3f0   :  { %v944_v58 = vrot.slane %v943_v0, 4 }
 0x3f1   :  { %v1615_v4 = vpop.f32.mrf.mxu0 }
 0x3f2   :  { %v945_v49 = vadd.f32 %v944_v58, %v943_v0  ;;  %v1108_v0 = vpop.permute.xlu1 %1107  ;;  %v2311_v58 = vsub.s32 1, %v1953_v11 }
 0x3f4   :  { %v946_v52 = vrot.slane %v945_v49, 2 }
 0x3f6   :  { %v947_v63 = vadd.f32 %v946_v52, %v945_v49  ;;  %v1103_v49 = vpop.permute.xlu0 %1102  ;;  %v1098_v52 = vpop.permute.xlu1 %1097 }
 0x3f8   :  { %v948_v51 = vrot.slane %v947_v63, 1 }
 0x3fa   :  { %v949_v54 = vadd.f32 %v948_v51, %v947_v63 }
 0x3fc   :  { %v951_v61 = vsel %vm950_vm3, %v936_v53, %v949_v54 }
 0x3fd   :  { %v953_v30 = vmax.f32 %v951_v61, 1e-30 }
 0x3ff   :  { %1681 = vrsqrt.f32 %v953_v30 }
 0x40c   :  { %v1682_v25 = vpop.eup %1681 }
 0x40d   :  { %v955_v56 = vmul.f32 %v1682_v25, %v953_v30 }
 0x40f   :  { %v960_v42 = vmul.f32 %v959_v57, %v955_v56  ;;  %v1093_v57 = vpop.permute.xlu0 %1092 }
 0x411   :  { %1683 = vtanh.f32 %v960_v42  ;;  %v1088_v42 = vpop.permute.xlu1 %1087 }
 0x41e   :  { %v1684_v62 = vpop.eup %1683 }
 0x41f   :  { %v962_v3 = vmul.f32 %v1684_v62, %v1682_v25  ;;  %v963_v5 = vmul.f32 %v1684_v62, %v1684_v62 }
 0x421   :  { %v964_v7 = vmul.f32 %v962_v3, %v920_v45  ;;  %v981_v47 = vmul.f32 %v979_v29, %v963_v5  ;;  %v974_v22 = vmul.f32 -1.0, %v963_v5 }
 0x423   :  { %v965_v10 = vmul.f32 -2.0, %v964_v7  ;;  %v975_v16 = vadd.f32 1.0, %v974_v22 }
 0x425   :  { %v966_v15 = vsub.f32 1.0, %v965_v10  ;;  %v995_v38 = vmul.f32 %v975_v16, %v975_v16 }
 0x427   :  { %v973_v21 = vsub.f32 %v966_v15, %v971_v20  ;;  %v982_v23 = vadd.f32 %v981_v47, %v966_v15  ;;  %v996_v9 = vmul.f32 %v995_v38, %v979_v29 }
 0x429   :  { %v983_v27 = vmax.f32 %v982_v23, 1e-15  ;;  %v991_v59 = vmul.f32 2.0, %v973_v21  ;;  %v989_v33 = vmul.f32 %v973_v21, %v973_v21  ;;  %v986_v12 = vmul.f32 %v973_v21, %v962_v3 }
 0x42b   :  { %1685 = vrcp.f32 %v983_v27  ;;  %v992_v28 = vmul.f32 %v991_v59, %v975_v16  ;;  %v990_v13 = vmul.f32 %v989_v33, %v963_v5 }
 0x42d   :  { %v993_v34 = vmul.f32 %v992_v28, %v964_v7 }
 0x42f   :  { %v994_v39 = vadd.f32 %v993_v34, %v990_v13 }
 0x431   :  { %v997_v37 = vadd.f32 %v996_v9, %v994_v39 }
 0x438   :  { %v1686_v40 = vpop.eup %1685 }
 0x439   :  { %v998_v24 = vmul.f32 %v1686_v40, %v1686_v40  ;;  %v987_v45 = vmul.f32 %v1686_v40, %v986_v12  ;;  %v988_v4 = vmul.f32 %v1686_v40, %v975_v16 }
 0x43b   :  { %v999_v14 = vmul.f32 %v998_v24, %v997_v37  ;;  %v1028_v48 = vrot.slane %v987_v45, %v2311_v58  ;;  %v1044_v50 = vrot.slane %v988_v4, %v2311_v58  ;;  %v1024_v63 = vrot.slane %v987_v45, %v1956_v18 }
 0x43c   :  { %v1040_v51 = vrot.slane %v988_v4, %v1956_v18 }
 0x43d   :  { %v1000_v44 = vmax.f32 %v999_v14, 1e-30  ;;  %v1076_v53 = vmul.f32 %v1028_v48, %v2304_v6  ;;  %v1132_v54 = vmul.f32 %v1123_v41, %v1044_v50  ;;  %v1075_v61 = vmul.f32 %v1028_v48, %v2298_v35 }
 0x43e   :  { %v1131_v30 = vmul.f32 %v1118_v17, %v1044_v50  ;;  %v1074_v31 = vmul.f32 %v1028_v48, %v2294_v32  ;;  %v1130_v46 = vmul.f32 %v1113_v1, %v1044_v50  ;;  %v1073_v55 = vmul.f32 %v1028_v48, %v2292_v26 }
 0x43f   :  { %1687 = vrsqrt.f32 %v1000_v44  ;;  %v1129_v25 = vmul.f32 %v1108_v0, %v1044_v50  ;;  %v1072_v56 = vmul.f32 %v1024_v63, %v2284_v19  ;;  %v1128_v3 = vmul.f32 %v1103_v49, %v1040_v51 }
 0x440   :  { %v1071_v5 = vmul.f32 %v1024_v63, %v2280_v8  ;;  %v1127_v6 = vmul.f32 %v1098_v52, %v1040_v51  ;;  %v1070_v7 = vmul.f32 %v1024_v63, %v2278_v36  ;;  %v1126_v35 = vmul.f32 %v1093_v57, %v1040_v51 }
 0x441   :  { %v1069_v10 = vmul.f32 %v1024_v63, %v2276_v60  ;;  %v1125_v32 = vmul.f32 %v1088_v42, %v1040_v51  ;;  %v1140_v15 = vadd.f32 %v1132_v54, %v1076_v53  ;;  %v1139_v47 = vadd.f32 %v1131_v30, %v1075_v61 }
 0x442   :  { %v1138_v20 = vadd.f32 %v1130_v46, %v1074_v31  ;;  %v1137_v21 = vadd.f32 %v1129_v25, %v1073_v55  ;;  %v1136_v22 = vadd.f32 %v1128_v3, %v1072_v56  ;;  %v1135_v23 = vadd.f32 %v1127_v6, %v1071_v5  ;;  %v1197_v46 = vld [vmem:[%s2362_s7] sm:$0xff]  ;;  %s1728_s7 = smov [#allocation2]  }
 0x443   :  { %v1134_v27 = vadd.f32 %v1126_v35, %v1070_v7  ;;  %v1133_v8 = vadd.f32 %v1125_v32, %v1069_v10  ;;  %s1382_s20 = sshll.u32 %s1728_s7, 4  ;;  %s1383_s20 = int_to_ptr.vmem [resolvable:$true] %s1382_s20 }
 0x444   :  { %s1703_s21 = scalar_lea.vmem %s1383_s20, 128  ;;  %p1708_p1 = scmp.lt.s32.totalorder %s1383_s20, %s1383_s20 }
 0x445   :  { %p1704_p0 = scmp.ne.s32.totalorder %s1383_s20, %s1703_s21  ;;  %p1709_p2 = scmp.lt.s32.totalorder %s1703_s21, %s1703_s21 }
 0x447   :  { %p1710_p3 = por %p1709_p2, %p1708_p1 }
 0x449   :  { %p1711_p4 = pnand %p1710_p3, %p1704_p0 }
 0x44c   :  { %v1688_v43 = vpop.eup %1687 }
 0x44d   :  { %v1002_v62 = vmul.f32 0.996, %v1688_v43 }
 0x44f   :  { %v1003_v29 = vmin.f32 %v1002_v62, 1.0 }
 0x451   :  { %v1056_v26 = vrot.slane %v1003_v29, %v1956_v18  ;;  %v1060_v19 = vrot.slane %v1003_v29, %v2311_v58 }
 0x453   :  { %v1148_v59 = vmul.f32 %v1140_v15, %v1060_v19  ;;  %v1147_v16 = vmul.f32 %v1139_v47, %v1060_v19  ;;  %v1146_v36 = vmul.f32 %v1138_v20, %v1060_v19  ;;  %v1145_v28 = vmul.f32 %v1137_v21, %v1060_v19 }
 0x454   :  { %v1144_v33 = vmul.f32 %v1136_v22, %v1056_v26  ;;  %v1143_v60 = vmul.f32 %v1135_v23, %v1056_v26  ;;  %v1142_v34 = vmul.f32 %v1134_v27, %v1056_v26  ;;  %v1141_v13 = vmul.f32 %v1133_v8, %v1056_v26 }
 0x455   :  { %v1156_v38 = vmax.f32 %v1148_v59, 0.0  ;;  %v1155_v39 = vmax.f32 %v1147_v16, 0.0  ;;  %v1154_v9 = vmax.f32 %v1146_v36, 0.0  ;;  %v1153_v40 = vmax.f32 %v1145_v28, 0.0 }
 0x456   :  { %v1151_v37 = vmax.f32 %v1143_v60, 0.0  ;;  %v1150_v24 = vmax.f32 %v1142_v34, 0.0  ;;  %v1149_v41 = vmax.f32 %v1141_v13, 0.0  ;;  %v1152_v44 = vmax.f32 %v1144_v33, 0.0 }
 0x457   :  { %1617 = vmatpush3.msra.mxu0 %v1156_v38  ;;  %v1171_v17 = vmul.f32 %v1154_v9, %v1154_v9  ;;  %v1170_v14 = vmul.f32 %v1153_v40, %v1153_v40  ;;  %v1172_v0 = vmul.f32 %v1155_v39, %v1155_v39  ;;  %v1173_v49 = vmul.f32 %v1156_v38, %v1156_v38 }
 0x458   :  { %1618 = vmatprep.subr.mxu0 %v1725_v2  ;;  %v1158_v12 = vmul.f32 %v1150_v24, %v1150_v24  ;;  %v1157_v1 = vmul.f32 %v1149_v41, %v1149_v41  ;;  %v1159_v4 = vmul.f32 %v1151_v37, %v1151_v37  ;;  %v1160_v50 = vmul.f32 %v1152_v44, %v1152_v44 }
 0x459   :  { %1619 = vmatpush3.msra.mxu0 %v1155_v39  ;;  %v1174_v45 = vadd.f32 %v1171_v17, %v1170_v14 }
 0x45a   :  { %1620 = vmatprep.subr.mxu0 %v1725_v2  ;;  %v1161_v48 = vadd.f32 %v1158_v12, %v1157_v1  ;;  %v1312_v12 = vpop.permute.xlu0 %1311 }
 0x45b   :  { %1621 = vmatpush3.msra.mxu0 %v1154_v9  ;;  %v1175_v52 = vadd.f32 %v1174_v45, %v1172_v0  ;;  %v1304_v45 = vpop.permute.xlu1 %1303 }
 0x45c   :  { %1622 = vmatprep.subr.mxu0 %v1725_v2  ;;  %v1162_v63 = vadd.f32 %v1161_v48, %v1159_v4 }
 0x45d   :  { %v1176_v51 = vadd.f32 %v1175_v52, %v1173_v49  ;;  %1623 = vmatpush3.msra.mxu0 %v1153_v40 }
 0x45e   :  { %1624 = vmatprep.subr.mxu0 %v1725_v2  ;;  %v1163_v53 = vadd.f32 %v1162_v63, %v1160_v50 }
 0x45f   :  { %v1177_v54 = vrot.slane %v1176_v51, 4  ;;  %1625 = vmatpush3.msra.mxu0 %v1152_v44 }
 0x460   :  { %1626 = vmatprep.subr.mxu0 %v1725_v2  ;;  %v1164_v61 = vrot.slane %v1163_v53, 4 }
 0x461   :  { %v1178_v30 = vadd.f32 %v1177_v54, %v1176_v51  ;;  %1627 = vmatpush3.msra.mxu0 %v1151_v37 }
 0x462   :  { %1628 = vmatprep.subr.mxu0 %v1725_v2  ;;  %v1165_v31 = vadd.f32 %v1164_v61, %v1163_v53 }
 0x463   :  { %v1179_v43 = vrot.slane %v1178_v30, 2  ;;  %1629 = vmatpush3.msra.mxu0 %v1150_v24 }
 0x464   :  { %1630 = vmatprep.subr.mxu0 %v1725_v2  ;;  %v1166_v55 = vrot.slane %v1165_v31, 2 }
 0x465   :  { %v1180_v25 = vadd.f32 %v1179_v43, %v1178_v30  ;;  %1631 = vmatpush3.msra.mxu0 %v1149_v41 }
 0x466   :  { %v1167_v56 = vadd.f32 %v1166_v55, %v1165_v31  ;;  %1633 = vmatmul.mubr.msk.f32.vlgmr.msra.gmra.mxu0 %vm1198_vm4, %v1197_v46 }
 0x467   :  { %v1181_v57 = vrot.slane %v1180_v25, 1 }
 0x468   :  { %v1168_v42 = vrot.slane %v1167_v56, 1 }
 0x469   :  { %v1182_v62 = vadd.f32 %v1181_v57, %v1180_v25 }
 0x46a   :  { %v1169_v3 = vadd.f32 %v1168_v42, %v1167_v56 }
 0x46c   :  { %v1183_v5 = vsel %vm950_vm3, %v1169_v3, %v1182_v62 }
 0x46d   :  { %v1184_v6 = vmax.f32 %v1183_v5, 1e-30 }
 0x46f   :  { %1689 = vrsqrt.f32 %v1184_v6 }
 0x47c   :  { %v1690_v7 = vpop.eup %1689 }
 0x47d   :  { %v1186_v35 = vmul.f32 %v1690_v7, %v1184_v6 }
 0x47f   :  { %v1415_v10 = vclamps-f32 %v1186_v35, 0.9999999 }
 0x481   :  { %v1190_v32 = vsub.f32 1.0, %v1415_v10  ;;  %v1189_v21 = vadd.f32 1.0, %v1415_v10 }
 0x483   :  { %1691 = vrcp.f32 %v1190_v32 }
 0x490   :  { %v1692_v19 = vpop.eup %1691 }
 0x491   :  { %v1192_v23 = vmul.f32 %v1692_v19, %v1189_v21 }
 0x493   :  { %1693 = vlog2.f32 %v1192_v23 }
 0x4a0   :  { %v1694_v60 = vpop.eup %1693 }
 0x4a1   :  { %v1194_v34 = vmul.f32 0.6931472, %v1694_v60 }
 0x4a3   :  { %v1195_v13 = vmul.f32 0.5, %v1194_v34 }
 0x4a5   :  { %v1196_v39 = vmul.f32 %v1690_v7, %v1195_v13 }
 0x526   :  { %v2338_v29 = vpop.f32.mrf.mxu0 }
 0x527   :  { %v1272_v2 = vmul.f32 %v2338_v29, %v2338_v29  ;;  %v1295_v41 = vrot.slane %v2338_v29, 6 }
 0x528   :  { %v1634_v15 = vpop.f32.mrf.mxu0 }
 0x529   :  { %v1274_v47 = vsel %vm1273_vm5, %v1272_v2, 0.0  ;;  %v1370_v15 = vpop.permute.xlu0 %1369 }
 0x52a   :  { %v1275_v26 = vrot.slane %v1274_v47, 4 }
 0x52c   :  { %v1276_v20 = vadd.f32 %v1275_v26, %v1274_v47 }
 0x52e   :  { %v1277_v22 = vrot.slane %v1276_v20, 2 }
 0x530   :  { %v1278_v27 = vadd.f32 %v1277_v22, %v1276_v20 }
 0x532   :  { %v1279_v8 = vrot.slane %v1278_v27, 1 }
 0x534   :  { %v1280_v59 = vadd.f32 %v1279_v8, %v1278_v27 }
 0x536   :  { %v1281_v16 = vsub.f32 %v1280_v59, %v1272_v2 }
 0x538   :  { %v1283_v36 = vrot.slane %v1281_v16, 7 }
 0x53a   :  { %v1285_v28 = vsel %vm950_vm3, %v1272_v2, %v1283_v36 }
 0x53b   :  { %v1287_v33 = vmax.f32 %v1285_v28, 1e-30 }
 0x53d   :  { %1695 = vrsqrt.f32 %v1287_v33 }
 0x54a   :  { %v1696_v38 = vpop.eup %1695 }
 0x54b   :  { %v1289_v9 = vmul.f32 %v1696_v38, %v1287_v33 }
 0x54d   :  { %v1290_v40 = vmul.f32 %v1289_v9, %v1196_v39 }
 0x54f   :  { %1697 = vtanh.f32 %v1290_v40 }
 0x55c   :  { %v1698_v37 = vpop.eup %1697 }
 0x55d   :  { %v1292_v24 = vmul.f32 %v1698_v37, %v1696_v38  ;;  %v1293_v17 = vmul.f32 %v1698_v37, %v1698_v37 }
 0x55f   :  { %v1297_v14 = vmul.f32 %v1295_v41, %v1292_v24  ;;  %v1314_v0 = vmul.f32 %v1312_v12, %v1293_v17  ;;  %v1307_v48 = vmul.f32 -1.0, %v1293_v17 }
 0x561   :  { %v1298_v44 = vmul.f32 -2.0, %v1297_v14  ;;  %v1308_v63 = vadd.f32 1.0, %v1307_v48 }
 0x563   :  { %v1299_v1 = vsub.f32 1.0, %v1298_v44  ;;  %v1328_v30 = vmul.f32 %v1308_v63, %v1308_v63 }
 0x565   :  { %v1306_v4 = vsub.f32 %v1299_v1, %v1304_v45  ;;  %v1315_v49 = vadd.f32 %v1314_v0, %v1299_v1  ;;  %v1329_v43 = vmul.f32 %v1328_v30, %v1312_v12 }
 0x567   :  { %v1316_v52 = vmax.f32 %v1315_v49, 1e-15  ;;  %v1324_v50 = vmul.f32 2.0, %v1306_v4  ;;  %v1322_v53 = vmul.f32 %v1306_v4, %v1306_v4  ;;  %v1319_v42 = vmul.f32 %v1306_v4, %v1292_v24 }
 0x569   :  { %1699 = vrcp.f32 %v1316_v52  ;;  %v1325_v51 = vmul.f32 %v1324_v50, %v1308_v63  ;;  %v1323_v61 = vmul.f32 %v1322_v53, %v1293_v17 }
 0x56b   :  { %v1326_v54 = vmul.f32 %v1325_v51, %v1297_v14 }
 0x56d   :  { %v1327_v31 = vadd.f32 %v1326_v54, %v1323_v61 }
 0x56f   :  { %v1330_v55 = vadd.f32 %v1329_v43, %v1327_v31 }
 0x576   :  { %v1700_v46 = vpop.eup %1699 }
 0x577   :  { %v1331_v25 = vmul.f32 %v1700_v46, %v1700_v46  ;;  %v1320_v62 = vmul.f32 %v1700_v46, %v1319_v42  ;;  %v1321_v3 = vmul.f32 %v1700_v46, %v1308_v63 }
 0x579   :  { %v1332_v56 = vmul.f32 %v1331_v25, %v1330_v55  ;;  %v1341_v5 = vrot.slane %v1320_v62, %v1956_v18  ;;  %v1345_v6 = vrot.slane %v1320_v62, %v2311_v58  ;;  %v1350_v7 = vrot.slane %v1321_v3, %v1956_v18 }
 0x57a   :  { %v1354_v35 = vrot.slane %v1321_v3, %v2311_v58 }
 0x57b   :  { %v1333_v57 = vmax.f32 %v1332_v56, 1e-30  ;;  %v1346_v10 = vsel %vm1337_vm6, %v1341_v5, %v1345_v6 }
 0x57c   :  { %v1355_v32 = vsel %vm1337_vm6, %v1350_v7, %v1354_v35  ;;  %v1365_v26 = vmul.f32 %v1346_v10, %v2338_v29 }
 0x57d   :  { %1701 = vrsqrt.f32 %v1333_v57  ;;  %v1372_v19 = vmul.f32 %v1370_v15, %v1355_v32 }
 0x57f   :  { %v1373_v23 = vadd.f32 %v1372_v19, %v1365_v26 }
 0x58a   :  { %v1702_v2 = vpop.eup %1701 }
 0x58b   :  { %v1335_v47 = vmul.f32 0.996, %v1702_v2 }
 0x58d   :  { %v1336_v20 = vmin.f32 %v1335_v47, 1.0 }
 0x58f   :  { %v1359_v21 = vrot.slane %v1336_v20, %v1956_v18  ;;  %v1363_v22 = vrot.slane %v1336_v20, %v2311_v58 }
 0x591   :  { %v1364_v27 = vsel %vm1337_vm6, %v1359_v21, %v1363_v22 }
 0x592   :  { %v1374_v8 = vmul.f32 %v1373_v23, %v1364_v27 }
 0x594   :  { %1375 = vst [vmem:[#allocation2] sm:$0x3f] %v1374_v8 }
 0x595   :  { %1714 = shalt.err (!%p1711_p4)
}
 0x596   :  { %1385 = dma.vmem_to_hbm [thread:$0]  %s1383_s20, 128, %s2365_s10, [#allocation3]  }
 0x597   :  { %1723 = dma.done.wait [#allocation3], 128  }
 0x598   :  { %1724 = vsyncadd [#allocation3], 4294967168 }
 0x599   :  { %1389 = vsyncpa [#allocation3], 1 }

</bundles_post_ra>
